<compile_context>
chip_gen: v5e
topology: v5e:2x2
jax: 0.10.0
libtpu: 0.0.40
codegen_flags: <defaults>
</compile_context>

<pallas_src>
import functools

import jax
import jax.numpy as jnp
from jax import lax
from jax.experimental import pallas as pl
from jax.experimental.pallas import tpu as pltpu

LANE = 128      # gate-slab / output / vocab padding (lane width)
BTILE = 8       # batch rows per grid step (f32 sublane count)


def gru_scoring_kernel(ids_ref, len_ref, table_ref, whh_ref, bhhn_ref,
                       wout_ref, bout_ref, out_ref, gi_scratch, *, inner_unroll):
    """ids_ref:  (Tp*BTILE, 1) int32, time-major flattened ids for this batch tile (pad rows = 0).
       len_ref:  (BTILE, 1)    int32 valid lengths (padded batch rows = 0).
       table_ref:(Vp, 3*Hp)    pre-folded per-id gate table = emb @ W_ih + b_ih (+ b_hh for r,z),
                               gate slabs lane-aligned to Hp=128, padded vocab rows zero.
       whh_ref:  (Hp, 3*Hp)    recurrent weights, gate-slab lane-aligned, zero padding rows/cols.
       bhhn_ref: (1, Hp)       b_hn (the only hidden bias that cannot be pre-folded).
       wout_ref: (Hp, Op), bout_ref: (1, Op) padded scoring head.
       out_ref:  (BTILE, Op).  gi_scratch: (TCHUNK*BTILE, 3*Hp) f32 chunked input-projection buffer."""
    btile = len_ref.shape[0]
    Hp = bhhn_ref.shape[1]
    Vp = table_ref.shape[0]
    chunk_rows = gi_scratch.shape[0]
    tchunk = chunk_rows // btile
    n_chunks = ids_ref.shape[0] // chunk_rows

    len_col = len_ref[...]                                   # (BTILE, 1)

    def chunk_body(c, h):
        # Fused embedding lookup + pre-folded input projection for TCHUNK steps at once:
        # one_hot(ids) @ table  ==  emb[ids] @ W_ih + b_ih (+ b_hh for r,z gates).
        base = pl.multiple_of(c * chunk_rows, chunk_rows)
        ids_chunk = ids_ref[pl.ds(base, chunk_rows), :]      # (TCHUNK*BTILE, 1)
        onehot = (ids_chunk ==
                  lax.broadcasted_iota(jnp.int32, (chunk_rows, Vp), 1)).astype(jnp.float32)
        gi_scratch[...] = jnp.dot(onehot, table_ref[...],
                                  preferred_element_type=jnp.float32)

        def step(tl, h_prev):                                # h carried in vregs, not VMEM
            t = c * tchunk + tl
            row = pl.multiple_of(tl * btile, btile)
            gi = gi_scratch[pl.ds(row, btile), :]            # (BTILE, 3*Hp)
            # Stream W_hh from VMEM every iteration (do NOT hoist: (128,384) f32 = 48 vregs).
            gh = jnp.dot(h_prev, whh_ref[...], preferred_element_type=jnp.float32)
            # lane-aligned gate slabs: [0:Hp) = r, [Hp:2Hp) = z, [2Hp:3Hp) = n
            r = jax.nn.sigmoid(gi[:, 0:Hp] + gh[:, 0:Hp])
            z = jax.nn.sigmoid(gi[:, Hp:2 * Hp] + gh[:, Hp:2 * Hp])
            n = jnp.tanh(gi[:, 2 * Hp:] + r * (gh[:, 2 * Hp:] + bhhn_ref[...]))
            h_new = (1.0 - z) * n + z * h_prev
            # packed-sequence semantics: steps at/after the sequence length do not update h
            return jnp.where(t < len_col, h_new, h_prev)

        return lax.fori_loop(0, tchunk, step, h, unroll=inner_unroll)

    h0 = jnp.zeros((btile, Hp), jnp.float32)
    h = lax.fori_loop(0, n_chunks, chunk_body, h0)

    out_ref[...] = (jnp.dot(h, wout_ref[...], preferred_element_type=jnp.float32)
                    + bout_ref[...]).astype(out_ref.dtype)


def fold_params(params):
    """Pre-fold/pad PyTorch-layout params into the lane-aligned kernel layout (done once)."""
    emb = params["emb"]                       # (n_bios, D)
    wih = params["wih_T"]                     # (D, 3H)   gate order [r, z, n]
    whh = params["whh_T"]                     # (H, 3H)
    bih = params["bih"][0]                    # (3H,)
    bhh = params["bhh"][0]                    # (3H,)
    wout = params["wout_T"]                   # (H, O)
    bout = params["bout"][0]                  # (O,)
    n_bios = emb.shape[0]
    H = whh.shape[0]
    O = wout.shape[1]
    Hp = -(-H // LANE) * LANE
    Op = -(-O // LANE) * LANE
    Vp = -(-n_bios // LANE) * LANE            # vocab padded to lane width (zero rows)

    # embedding @ W_ih + b_ih, plus b_hh folded in for the r and z gates (n keeps b_hn separate)
    gi = emb @ wih + bih                      # (n_bios, 3H)
    gi = gi.at[:, 0:H].add(bhh[0:H]).at[:, H:2 * H].add(bhh[H:2 * H])

    table = jnp.zeros((Vp, 3 * Hp), jnp.float32)
    whh_pad = jnp.zeros((Hp, 3 * Hp), jnp.float32)
    for g in range(3):
        table = table.at[:n_bios, g * Hp:g * Hp + H].set(gi[:, g * H:(g + 1) * H])
        whh_pad = whh_pad.at[:H, g * Hp:g * Hp + H].set(whh[:, g * H:(g + 1) * H])
    bhhn = jnp.zeros((1, Hp), jnp.float32).at[0, :H].set(bhh[2 * H:3 * H])
    wout_pad = jnp.zeros((Hp, Op), jnp.float32).at[:H, :O].set(wout)
    bout_pad = jnp.zeros((1, Op), jnp.float32).at[0, :O].set(bout)
    return {"table": table, "whh": whh_pad, "bhhn": bhhn, "wout": wout_pad, "bout": bout_pad,
            "H": H, "O": O, "Hp": Hp, "Op": Op, "Vp": Vp}


def bio_encoder_rnn_small_forward(kparams, bio_ids, bio_lengths, *, btile=BTILE, tchunk=32):
    """Pallas-backed forward of bioEncoderRNNsmall. Returns (B, bio_out)."""
    B, T = bio_ids.shape
    Hp, Op, Vp = kparams["Hp"], kparams["Op"], kparams["Vp"]
    num_tiles = -(-B // btile)
    Bp = num_tiles * btile
    tchunk = min(tchunk, T)
    n_chunks = -(-T // tchunk)
    Tp = n_chunks * tchunk                    # padded steps never satisfy t < length -> no-ops

    # time-major ids padded to (Tp, Bp), then per-batch-tile flattened: (num_tiles, Tp*btile, 1)
    ids_tm = jnp.zeros((Tp, Bp), jnp.int32).at[:T, :B].set(bio_ids.T.astype(jnp.int32))
    ids_tiles = ids_tm.reshape(Tp, num_tiles, btile).transpose(1, 0, 2).reshape(
        num_tiles, Tp * btile, 1)
    len_tiles = jnp.zeros((Bp,), jnp.int32).at[:B].set(
        bio_lengths.astype(jnp.int32)).reshape(num_tiles, btile, 1)

    inner_unroll = True if tchunk <= 8 else 8
    kernel = functools.partial(gru_scoring_kernel, inner_unroll=inner_unroll)

    # rough VMEM budget (double-buffered weights/tiles + gi scratch) with 2x headroom
    w_bytes = 4 * sum(int(kparams[k].size) for k in ("table", "whh", "bhhn", "wout", "bout"))
    tile_bytes = 4 * (Tp * btile + btile + btile * Op)
    scratch_bytes = 4 * tchunk * btile * 3 * Hp
    vmem_limit = min(max(2 * (2 * w_bytes + 2 * tile_bytes + scratch_bytes),
                         16 * 1024 * 1024), 64 * 1024 * 1024)

    out = pl.pallas_call(
        kernel,
        out_shape=jax.ShapeDtypeStruct((Bp, Op), jnp.float32),
        grid=(num_tiles,),
        in_specs=[
            pl.BlockSpec((None, Tp * btile, 1), lambda i: (i, 0, 0)),   # ids (per batch tile)
            pl.BlockSpec((None, btile, 1), lambda i: (i, 0, 0)),        # lengths
            pl.BlockSpec((Vp, 3 * Hp), lambda i: (0, 0)),               # folded gate table
            pl.BlockSpec((Hp, 3 * Hp), lambda i: (0, 0)),               # W_hh
            pl.BlockSpec((1, Hp), lambda i: (0, 0)),                    # b_hn
            pl.BlockSpec((Hp, Op), lambda i: (0, 0)),                   # W_out
            pl.BlockSpec((1, Op), lambda i: (0, 0)),                    # b_out
        ],
        out_specs=pl.BlockSpec((btile, Op), lambda i: (i, 0)),
        scratch_shapes=[pltpu.VMEM((tchunk * btile, 3 * Hp), jnp.float32)],
        compiler_params=pltpu.CompilerParams(
            dimension_semantics=("parallel",),          # batch tiles shard across TCs on v7x
            vmem_limit_bytes=vmem_limit),
    )(ids_tiles, len_tiles, kparams["table"], kparams["whh"], kparams["bhhn"],
      kparams["wout"], kparams["bout"])
    return out[:B, :kparams["O"]]


def reference_forward(params, bio_ids, bio_lengths):
    """Pure-JAX reference (mirrors torch GRU + pack_padded_sequence + Linear)."""
    emb = params["emb"][bio_ids]                         # (B, T, D)
    B, T, _ = emb.shape
    H = params["whh_T"].shape[0]
    h = jnp.zeros((B, H), jnp.float32)
    for t in range(T):
        x_t = emb[:, t, :]
        gi = x_t @ params["wih_T"] + params["bih"]
        gh = h @ params["whh_T"] + params["bhh"]
        r = jax.nn.sigmoid(gi[:, :H] + gh[:, :H])
        z = jax.nn.sigmoid(gi[:, H:2 * H] + gh[:, H:2 * H])
        n = jnp.tanh(gi[:, 2 * H:] + r * gh[:, 2 * H:])
        h_new = (1.0 - z) * n + z * h
        mask = (t < bio_lengths)[:, None]
        h = jnp.where(mask, h_new, h)
    return h @ params["wout_T"] + params["bout"]


def init_params(key, n_bios, bio_dim, bio_rnn, bio_out):
    """Deterministic synthetic parameters (same shapes as the PyTorch module)."""
    ks = jax.random.split(key, 8)
    k_gru = 1.0 / jnp.sqrt(bio_rnn)
    k_lin = 1.0 / jnp.sqrt(bio_rnn)
    u = lambda k, shape, b: jax.random.uniform(k, shape, jnp.float32, -b, b)
    return {
        # nn.Embedding(n_bios, bio_dim)
        "emb": jax.random.normal(ks[0], (n_bios, bio_dim), jnp.float32),
        # nn.GRU(bio_dim, bio_rnn): weight_ih_l0 (3H, D) / weight_hh_l0 (3H, H), stored transposed.
        "wih_T": u(ks[1], (bio_dim, 3 * bio_rnn), k_gru),
        "whh_T": u(ks[2], (bio_rnn, 3 * bio_rnn), k_gru),
        "bih": u(ks[3], (1, 3 * bio_rnn), k_gru),
        "bhh": u(ks[4], (1, 3 * bio_rnn), k_gru),
        # nn.Linear(bio_rnn, bio_out), weight (O, H) stored transposed.
        "wout_T": u(ks[5], (bio_rnn, bio_out), k_lin),
        "bout": u(ks[6], (1, bio_out), k_lin),
    }


if __name__ == "__main__":
    # d_args: n_bios=16, bio_dim=32, bio_rnn=32, bio_out=8
    N_BIOS, BIO_DIM, BIO_RNN, BIO_OUT = 16, 32, 32, 8
    B, T = 2, 8

    key = jax.random.PRNGKey(0)
    k_params, k_ids = jax.random.split(key)

    params = init_params(k_params, N_BIOS, BIO_DIM, BIO_RNN, BIO_OUT)
    kparams = fold_params(params)

    bio_ids = jax.random.randint(k_ids, (B, T), 0, N_BIOS, dtype=jnp.int32)
    # pack_padded_sequence default enforce_sorted=True -> descending lengths
    bio_lengths = jnp.array([T, 5], dtype=jnp.int32)

    out = bio_encoder_rnn_small_forward(kparams, bio_ids, bio_lengths)
    out = jax.block_until_ready(out)

    ref = reference_forward(params, bio_ids, bio_lengths)
    assert out.shape == (B, BIO_OUT)
    assert jnp.allclose(out, ref, atol=1e-4, rtol=1e-4), (out, ref)

    print("KERNEL_OK")
</pallas_src>

<mosaic_0001>
module attributes {stable_mosaic.version = 11 : i64} {
  func.func @gru_scoring_kernel(%arg0: i32, %arg1: memref<1x64x1xi32, #tpu.memory_space<vmem>>, %arg2: memref<1x8x1xi32, #tpu.memory_space<vmem>>, %arg3: memref<128x384xf32, #tpu.memory_space<vmem>>, %arg4: memref<128x384xf32, #tpu.memory_space<vmem>>, %arg5: memref<1x128xf32, #tpu.memory_space<vmem>>, %arg6: memref<128x128xf32, #tpu.memory_space<vmem>>, %arg7: memref<1x128xf32, #tpu.memory_space<vmem>>, %arg8: memref<8x128xf32, #tpu.memory_space<vmem>>, %arg9: memref<64x384xf32, #tpu.memory_space<vmem>>) attributes {dimension_semantics = [#tpu.dimension_semantics<parallel>], iteration_bounds = array<i64: 1>, scalar_prefetch = 0 : i64, scratch_operands = 1 : i64, tpu.core_type = #tpu.core_type<tc>, window_params = [{transform_indices = @transform_0, window_bounds = array<i64: 1, 64, 1>}, {transform_indices = @transform_1, window_bounds = array<i64: 1, 8, 1>}, {pipeline_mode = #tpu.pipeline_mode<synchronous>, transform_indices = @transform_2, window_bounds = array<i64: 128, 384>}, {pipeline_mode = #tpu.pipeline_mode<synchronous>, transform_indices = @transform_3, window_bounds = array<i64: 128, 384>}, {pipeline_mode = #tpu.pipeline_mode<synchronous>, transform_indices = @transform_4, window_bounds = array<i64: 1, 128>}, {pipeline_mode = #tpu.pipeline_mode<synchronous>, transform_indices = @transform_5, window_bounds = array<i64: 128, 128>}, {pipeline_mode = #tpu.pipeline_mode<synchronous>, transform_indices = @transform_6, window_bounds = array<i64: 1, 128>}, {transform_indices = @transform_7, window_bounds = array<i64: 8, 128>}]} {
    %c0 = arith.constant 0 : index
    %c0_0 = arith.constant 0 : index
    %c0_1 = arith.constant 0 : index
    %0 = vector.load %arg2[%c0, %c0_0, %c0_1] : memref<1x8x1xi32, #tpu.memory_space<vmem>>, vector<1x8x1xi32>
    %1 = vector.shape_cast %0 : vector<1x8x1xi32> to vector<8x1xi32>
    %cst = arith.constant 0.000000e+00 : f32
    %2 = vector.broadcast %cst : f32 to vector<8x128xf32>
    %c0_i32 = arith.constant 0 : i32
    %c64_i32 = arith.constant 64 : i32
    %3 = arith.muli %c0_i32, %c64_i32 : i32
    %4 = tpu.assume_multiple %3, 64 : i32
    %c0_2 = arith.constant 0 : index
    %5 = arith.index_cast %4 : i32 to index
    %c0_3 = arith.constant 0 : index
    %6 = vector.load %arg1[%c0_2, %5, %c0_3] : memref<1x64x1xi32, #tpu.memory_space<vmem>>, vector<1x64x1xi32>
    %7 = vector.shape_cast %6 : vector<1x64x1xi32> to vector<64x1xi32>
    %8 = tpu.iota {dimensions = array<i32: 1>} : vector<64x128xi32>
    %9 = vector.broadcast %7 : vector<64x1xi32> to vector<64x128xi32>
    %10 = arith.cmpi eq, %9, %8 : vector<64x128xi32>
    %11 = arith.extui %10 : vector<64x128xi1> to vector<64x128xi32>
    %12 = arith.sitofp %11 : vector<64x128xi32> to vector<64x128xf32>
    %c0_4 = arith.constant 0 : index
    %c0_5 = arith.constant 0 : index
    %13 = vector.load %arg3[%c0_4, %c0_5] : memref<128x384xf32, #tpu.memory_space<vmem>>, vector<128x384xf32>
    %cst_6 = arith.constant dense<0.000000e+00> : vector<64x384xf32>
    %14 = tpu.matmul %12, %13, %cst_6 {dimension_numbers = #tpu.dot_dimension_numbers<[1], [0], [0], [1], [0, 0, 1, 1], [], []>} : vector<64x128xf32>, vector<128x384xf32>, vector<64x384xf32> -> vector<64x384xf32>
    %c0_7 = arith.constant 0 : index
    %c0_8 = arith.constant 0 : index
    %15 = vector.load %arg9[%c0_7, %c0_8] : memref<64x384xf32, #tpu.memory_space<vmem>>, vector<64x384xf32>
    tpu.vector_store %arg9[%c0_7, %c0_8], %14 {strides = array<i32>} : memref<64x384xf32, #tpu.memory_space<vmem>>, vector<64x384xf32>,
    %c0_i32_9 = arith.constant 0 : i32
    %c8_i32 = arith.constant 8 : i32
    %16 = arith.muli %c0_i32, %c8_i32 : i32
    %17 = arith.addi %16, %c0_i32_9 : i32
    %c8_i32_10 = arith.constant 8 : i32
    %18 = arith.muli %c0_i32_9, %c8_i32_10 : i32
    %19 = tpu.assume_multiple %18, 8 : i32
    %20 = arith.index_cast %19 : i32 to index
    %c0_11 = arith.constant 0 : index
    %21 = vector.load %arg9[%20, %c0_11] : memref<64x384xf32, #tpu.memory_space<vmem>>, vector<8x384xf32>
    %c0_12 = arith.constant 0 : index
    %c0_13 = arith.constant 0 : index
    %22 = vector.load %arg4[%c0_12, %c0_13] : memref<128x384xf32, #tpu.memory_space<vmem>>, vector<128x384xf32>
    %cst_14 = arith.constant dense<0.000000e+00> : vector<8x384xf32>
    %23 = tpu.matmul %2, %22, %cst_14 {dimension_numbers = #tpu.dot_dimension_numbers<[1], [0], [0], [1], [0, 0, 1, 1], [], []>} : vector<8x128xf32>, vector<128x384xf32>, vector<8x384xf32> -> vector<8x384xf32>
    %24 = vector.extract_strided_slice %21 {offsets = [0, 0], sizes = [8, 128], strides = [1, 1]} : vector<8x384xf32> to vector<8x128xf32>
    %25 = vector.extract_strided_slice %23 {offsets = [0, 0], sizes = [8, 128], strides = [1, 1]} : vector<8x384xf32> to vector<8x128xf32>
    %26 = arith.addf %24, %25 : vector<8x128xf32>
    %27 = arith.negf %26 : vector<8x128xf32>
    %28 = math.exp %27 : vector<8x128xf32>
    %cst_15 = arith.constant 1.000000e+00 : f32
    %29 = vector.broadcast %cst_15 : f32 to vector<8x128xf32>
    %30 = arith.addf %29, %28 : vector<8x128xf32>
    %31 = arith.divf %29, %30 : vector<8x128xf32>
    %32 = vector.extract_strided_slice %21 {offsets = [0, 128], sizes = [8, 128], strides = [1, 1]} : vector<8x384xf32> to vector<8x128xf32>
    %33 = vector.extract_strided_slice %23 {offsets = [0, 128], sizes = [8, 128], strides = [1, 1]} : vector<8x384xf32> to vector<8x128xf32>
    %34 = arith.addf %32, %33 : vector<8x128xf32>
    %35 = arith.negf %34 : vector<8x128xf32>
    %36 = math.exp %35 : vector<8x128xf32>
    %cst_16 = arith.constant 1.000000e+00 : f32
    %37 = vector.broadcast %cst_16 : f32 to vector<8x128xf32>
    %38 = arith.addf %37, %36 : vector<8x128xf32>
    %39 = arith.divf %37, %38 : vector<8x128xf32>
    %40 = vector.extract_strided_slice %21 {offsets = [0, 256], sizes = [8, 128], strides = [1, 1]} : vector<8x384xf32> to vector<8x128xf32>
    %41 = vector.extract_strided_slice %23 {offsets = [0, 256], sizes = [8, 128], strides = [1, 1]} : vector<8x384xf32> to vector<8x128xf32>
    %c0_17 = arith.constant 0 : index
    %c0_18 = arith.constant 0 : index
    %42 = vector.load %arg5[%c0_17, %c0_18] : memref<1x128xf32, #tpu.memory_space<vmem>>, vector<1x128xf32>
    %43 = vector.broadcast %42 : vector<1x128xf32> to vector<8x128xf32>
    %44 = arith.addf %41, %43 : vector<8x128xf32>
    %45 = arith.mulf %31, %44 : vector<8x128xf32>
    %46 = arith.addf %40, %45 : vector<8x128xf32>
    %47 = math.tanh %46 : vector<8x128xf32>
    %cst_19 = arith.constant 1.000000e+00 : f32
    %48 = vector.broadcast %cst_19 : f32 to vector<8x128xf32>
    %49 = arith.subf %48, %39 : vector<8x128xf32>
    %50 = arith.mulf %49, %47 : vector<8x128xf32>
    %51 = arith.mulf %39, %2 : vector<8x128xf32>
    %52 = arith.addf %50, %51 : vector<8x128xf32>
    %53 = vector.broadcast %17 : i32 to vector<8x1xi32>
    %54 = arith.cmpi slt, %53, %1 : vector<8x1xi32>
    %55 = vector.shape_cast %54 : vector<8x1xi1> to vector<8x1xi1>
    %56 = vector.broadcast %55 : vector<8x1xi1> to vector<8x128xi1>
    %57 = arith.select %56, %52, %2 : vector<8x128xi1>, vector<8x128xf32>
    %c1_i32 = arith.constant 1 : i32
    %c8_i32_20 = arith.constant 8 : i32
    %58 = arith.muli %c0_i32, %c8_i32_20 : i32
    %59 = arith.addi %58, %c1_i32 : i32
    %c8_i32_21 = arith.constant 8 : i32
    %60 = arith.muli %c1_i32, %c8_i32_21 : i32
    %61 = tpu.assume_multiple %60, 8 : i32
    %62 = arith.index_cast %61 : i32 to index
    %c0_22 = arith.constant 0 : index
    %63 = vector.load %arg9[%62, %c0_22] : memref<64x384xf32, #tpu.memory_space<vmem>>, vector<8x384xf32>
    %c0_23 = arith.constant 0 : index
    %c0_24 = arith.constant 0 : index
    %64 = vector.load %arg4[%c0_23, %c0_24] : memref<128x384xf32, #tpu.memory_space<vmem>>, vector<128x384xf32>
    %cst_25 = arith.constant dense<0.000000e+00> : vector<8x384xf32>
    %65 = tpu.matmul %57, %64, %cst_25 {dimension_numbers = #tpu.dot_dimension_numbers<[1], [0], [0], [1], [0, 0, 1, 1], [], []>} : vector<8x128xf32>, vector<128x384xf32>, vector<8x384xf32> -> vector<8x384xf32>
    %66 = vector.extract_strided_slice %63 {offsets = [0, 0], sizes = [8, 128], strides = [1, 1]} : vector<8x384xf32> to vector<8x128xf32>
    %67 = vector.extract_strided_slice %65 {offsets = [0, 0], sizes = [8, 128], strides = [1, 1]} : vector<8x384xf32> to vector<8x128xf32>
    %68 = arith.addf %66, %67 : vector<8x128xf32>
    %69 = arith.negf %68 : vector<8x128xf32>
    %70 = math.exp %69 : vector<8x128xf32>
    %cst_26 = arith.constant 1.000000e+00 : f32
    %71 = vector.broadcast %cst_26 : f32 to vector<8x128xf32>
    %72 = arith.addf %71, %70 : vector<8x128xf32>
    %73 = arith.divf %71, %72 : vector<8x128xf32>
    %74 = vector.extract_strided_slice %63 {offsets = [0, 128], sizes = [8, 128], strides = [1, 1]} : vector<8x384xf32> to vector<8x128xf32>
    %75 = vector.extract_strided_slice %65 {offsets = [0, 128], sizes = [8, 128], strides = [1, 1]} : vector<8x384xf32> to vector<8x128xf32>
    %76 = arith.addf %74, %75 : vector<8x128xf32>
    %77 = arith.negf %76 : vector<8x128xf32>
    %78 = math.exp %77 : vector<8x128xf32>
    %cst_27 = arith.constant 1.000000e+00 : f32
    %79 = vector.broadcast %cst_27 : f32 to vector<8x128xf32>
    %80 = arith.addf %79, %78 : vector<8x128xf32>
    %81 = arith.divf %79, %80 : vector<8x128xf32>
    %82 = vector.extract_strided_slice %63 {offsets = [0, 256], sizes = [8, 128], strides = [1, 1]} : vector<8x384xf32> to vector<8x128xf32>
    %83 = vector.extract_strided_slice %65 {offsets = [0, 256], sizes = [8, 128], strides = [1, 1]} : vector<8x384xf32> to vector<8x128xf32>
    %c0_28 = arith.constant 0 : index
    %c0_29 = arith.constant 0 : index
    %84 = vector.load %arg5[%c0_28, %c0_29] : memref<1x128xf32, #tpu.memory_space<vmem>>, vector<1x128xf32>
    %85 = vector.broadcast %84 : vector<1x128xf32> to vector<8x128xf32>
    %86 = arith.addf %83, %85 : vector<8x128xf32>
    %87 = arith.mulf %73, %86 : vector<8x128xf32>
    %88 = arith.addf %82, %87 : vector<8x128xf32>
    %89 = math.tanh %88 : vector<8x128xf32>
    %cst_30 = arith.constant 1.000000e+00 : f32
    %90 = vector.broadcast %cst_30 : f32 to vector<8x128xf32>
    %91 = arith.subf %90, %81 : vector<8x128xf32>
    %92 = arith.mulf %91, %89 : vector<8x128xf32>
    %93 = arith.mulf %81, %57 : vector<8x128xf32>
    %94 = arith.addf %92, %93 : vector<8x128xf32>
    %95 = vector.broadcast %59 : i32 to vector<8x1xi32>
    %96 = arith.cmpi slt, %95, %1 : vector<8x1xi32>
    %97 = vector.shape_cast %96 : vector<8x1xi1> to vector<8x1xi1>
    %98 = vector.broadcast %97 : vector<8x1xi1> to vector<8x128xi1>
    %99 = arith.select %98, %94, %57 : vector<8x128xi1>, vector<8x128xf32>
    %c2_i32 = arith.constant 2 : i32
    %c8_i32_31 = arith.constant 8 : i32
    %100 = arith.muli %c0_i32, %c8_i32_31 : i32
    %101 = arith.addi %100, %c2_i32 : i32
    %c8_i32_32 = arith.constant 8 : i32
    %102 = arith.muli %c2_i32, %c8_i32_32 : i32
    %103 = tpu.assume_multiple %102, 8 : i32
    %104 = arith.index_cast %103 : i32 to index
    %c0_33 = arith.constant 0 : index
    %105 = vector.load %arg9[%104, %c0_33] : memref<64x384xf32, #tpu.memory_space<vmem>>, vector<8x384xf32>
    %c0_34 = arith.constant 0 : index
    %c0_35 = arith.constant 0 : index
    %106 = vector.load %arg4[%c0_34, %c0_35] : memref<128x384xf32, #tpu.memory_space<vmem>>, vector<128x384xf32>
    %cst_36 = arith.constant dense<0.000000e+00> : vector<8x384xf32>
    %107 = tpu.matmul %99, %106, %cst_36 {dimension_numbers = #tpu.dot_dimension_numbers<[1], [0], [0], [1], [0, 0, 1, 1], [], []>} : vector<8x128xf32>, vector<128x384xf32>, vector<8x384xf32> -> vector<8x384xf32>
    %108 = vector.extract_strided_slice %105 {offsets = [0, 0], sizes = [8, 128], strides = [1, 1]} : vector<8x384xf32> to vector<8x128xf32>
    %109 = vector.extract_strided_slice %107 {offsets = [0, 0], sizes = [8, 128], strides = [1, 1]} : vector<8x384xf32> to vector<8x128xf32>
    %110 = arith.addf %108, %109 : vector<8x128xf32>
    %111 = arith.negf %110 : vector<8x128xf32>
    %112 = math.exp %111 : vector<8x128xf32>
    %cst_37 = arith.constant 1.000000e+00 : f32
    %113 = vector.broadcast %cst_37 : f32 to vector<8x128xf32>
    %114 = arith.addf %113, %112 : vector<8x128xf32>
    %115 = arith.divf %113, %114 : vector<8x128xf32>
    %116 = vector.extract_strided_slice %105 {offsets = [0, 128], sizes = [8, 128], strides = [1, 1]} : vector<8x384xf32> to vector<8x128xf32>
    %117 = vector.extract_strided_slice %107 {offsets = [0, 128], sizes = [8, 128], strides = [1, 1]} : vector<8x384xf32> to vector<8x128xf32>
    %118 = arith.addf %116, %117 : vector<8x128xf32>
    %119 = arith.negf %118 : vector<8x128xf32>
    %120 = math.exp %119 : vector<8x128xf32>
    %cst_38 = arith.constant 1.000000e+00 : f32
    %121 = vector.broadcast %cst_38 : f32 to vector<8x128xf32>
    %122 = arith.addf %121, %120 : vector<8x128xf32>
    %123 = arith.divf %121, %122 : vector<8x128xf32>
    %124 = vector.extract_strided_slice %105 {offsets = [0, 256], sizes = [8, 128], strides = [1, 1]} : vector<8x384xf32> to vector<8x128xf32>
    %125 = vector.extract_strided_slice %107 {offsets = [0, 256], sizes = [8, 128], strides = [1, 1]} : vector<8x384xf32> to vector<8x128xf32>
    %c0_39 = arith.constant 0 : index
    %c0_40 = arith.constant 0 : index
    %126 = vector.load %arg5[%c0_39, %c0_40] : memref<1x128xf32, #tpu.memory_space<vmem>>, vector<1x128xf32>
    %127 = vector.broadcast %126 : vector<1x128xf32> to vector<8x128xf32>
    %128 = arith.addf %125, %127 : vector<8x128xf32>
    %129 = arith.mulf %115, %128 : vector<8x128xf32>
    %130 = arith.addf %124, %129 : vector<8x128xf32>
    %131 = math.tanh %130 : vector<8x128xf32>
    %cst_41 = arith.constant 1.000000e+00 : f32
    %132 = vector.broadcast %cst_41 : f32 to vector<8x128xf32>
    %133 = arith.subf %132, %123 : vector<8x128xf32>
    %134 = arith.mulf %133, %131 : vector<8x128xf32>
    %135 = arith.mulf %123, %99 : vector<8x128xf32>
    %136 = arith.addf %134, %135 : vector<8x128xf32>
    %137 = vector.broadcast %101 : i32 to vector<8x1xi32>
    %138 = arith.cmpi slt, %137, %1 : vector<8x1xi32>
    %139 = vector.shape_cast %138 : vector<8x1xi1> to vector<8x1xi1>
    %140 = vector.broadcast %139 : vector<8x1xi1> to vector<8x128xi1>
    %141 = arith.select %140, %136, %99 : vector<8x128xi1>, vector<8x128xf32>
    %c3_i32 = arith.constant 3 : i32
    %c8_i32_42 = arith.constant 8 : i32
    %142 = arith.muli %c0_i32, %c8_i32_42 : i32
    %143 = arith.addi %142, %c3_i32 : i32
    %c8_i32_43 = arith.constant 8 : i32
    %144 = arith.muli %c3_i32, %c8_i32_43 : i32
    %145 = tpu.assume_multiple %144, 8 : i32
    %146 = arith.index_cast %145 : i32 to index
    %c0_44 = arith.constant 0 : index
    %147 = vector.load %arg9[%146, %c0_44] : memref<64x384xf32, #tpu.memory_space<vmem>>, vector<8x384xf32>
    %c0_45 = arith.constant 0 : index
    %c0_46 = arith.constant 0 : index
    %148 = vector.load %arg4[%c0_45, %c0_46] : memref<128x384xf32, #tpu.memory_space<vmem>>, vector<128x384xf32>
    %cst_47 = arith.constant dense<0.000000e+00> : vector<8x384xf32>
    %149 = tpu.matmul %141, %148, %cst_47 {dimension_numbers = #tpu.dot_dimension_numbers<[1], [0], [0], [1], [0, 0, 1, 1], [], []>} : vector<8x128xf32>, vector<128x384xf32>, vector<8x384xf32> -> vector<8x384xf32>
    %150 = vector.extract_strided_slice %147 {offsets = [0, 0], sizes = [8, 128], strides = [1, 1]} : vector<8x384xf32> to vector<8x128xf32>
    %151 = vector.extract_strided_slice %149 {offsets = [0, 0], sizes = [8, 128], strides = [1, 1]} : vector<8x384xf32> to vector<8x128xf32>
    %152 = arith.addf %150, %151 : vector<8x128xf32>
    %153 = arith.negf %152 : vector<8x128xf32>
    %154 = math.exp %153 : vector<8x128xf32>
    %cst_48 = arith.constant 1.000000e+00 : f32
    %155 = vector.broadcast %cst_48 : f32 to vector<8x128xf32>
    %156 = arith.addf %155, %154 : vector<8x128xf32>
    %157 = arith.divf %155, %156 : vector<8x128xf32>
    %158 = vector.extract_strided_slice %147 {offsets = [0, 128], sizes = [8, 128], strides = [1, 1]} : vector<8x384xf32> to vector<8x128xf32>
    %159 = vector.extract_strided_slice %149 {offsets = [0, 128], sizes = [8, 128], strides = [1, 1]} : vector<8x384xf32> to vector<8x128xf32>
    %160 = arith.addf %158, %159 : vector<8x128xf32>
    %161 = arith.negf %160 : vector<8x128xf32>
    %162 = math.exp %161 : vector<8x128xf32>
    %cst_49 = arith.constant 1.000000e+00 : f32
    %163 = vector.broadcast %cst_49 : f32 to vector<8x128xf32>
    %164 = arith.addf %163, %162 : vector<8x128xf32>
    %165 = arith.divf %163, %164 : vector<8x128xf32>
    %166 = vector.extract_strided_slice %147 {offsets = [0, 256], sizes = [8, 128], strides = [1, 1]} : vector<8x384xf32> to vector<8x128xf32>
    %167 = vector.extract_strided_slice %149 {offsets = [0, 256], sizes = [8, 128], strides = [1, 1]} : vector<8x384xf32> to vector<8x128xf32>
    %c0_50 = arith.constant 0 : index
    %c0_51 = arith.constant 0 : index
    %168 = vector.load %arg5[%c0_50, %c0_51] : memref<1x128xf32, #tpu.memory_space<vmem>>, vector<1x128xf32>
    %169 = vector.broadcast %168 : vector<1x128xf32> to vector<8x128xf32>
    %170 = arith.addf %167, %169 : vector<8x128xf32>
    %171 = arith.mulf %157, %170 : vector<8x128xf32>
    %172 = arith.addf %166, %171 : vector<8x128xf32>
    %173 = math.tanh %172 : vector<8x128xf32>
    %cst_52 = arith.constant 1.000000e+00 : f32
    %174 = vector.broadcast %cst_52 : f32 to vector<8x128xf32>
    %175 = arith.subf %174, %165 : vector<8x128xf32>
    %176 = arith.mulf %175, %173 : vector<8x128xf32>
    %177 = arith.mulf %165, %141 : vector<8x128xf32>
    %178 = arith.addf %176, %177 : vector<8x128xf32>
    %179 = vector.broadcast %143 : i32 to vector<8x1xi32>
    %180 = arith.cmpi slt, %179, %1 : vector<8x1xi32>
    %181 = vector.shape_cast %180 : vector<8x1xi1> to vector<8x1xi1>
    %182 = vector.broadcast %181 : vector<8x1xi1> to vector<8x128xi1>
    %183 = arith.select %182, %178, %141 : vector<8x128xi1>, vector<8x128xf32>
    %c4_i32 = arith.constant 4 : i32
    %c8_i32_53 = arith.constant 8 : i32
    %184 = arith.muli %c0_i32, %c8_i32_53 : i32
    %185 = arith.addi %184, %c4_i32 : i32
    %c8_i32_54 = arith.constant 8 : i32
    %186 = arith.muli %c4_i32, %c8_i32_54 : i32
    %187 = tpu.assume_multiple %186, 8 : i32
    %188 = arith.index_cast %187 : i32 to index
    %c0_55 = arith.constant 0 : index
    %189 = vector.load %arg9[%188, %c0_55] : memref<64x384xf32, #tpu.memory_space<vmem>>, vector<8x384xf32>
    %c0_56 = arith.constant 0 : index
    %c0_57 = arith.constant 0 : index
    %190 = vector.load %arg4[%c0_56, %c0_57] : memref<128x384xf32, #tpu.memory_space<vmem>>, vector<128x384xf32>
    %cst_58 = arith.constant dense<0.000000e+00> : vector<8x384xf32>
    %191 = tpu.matmul %183, %190, %cst_58 {dimension_numbers = #tpu.dot_dimension_numbers<[1], [0], [0], [1], [0, 0, 1, 1], [], []>} : vector<8x128xf32>, vector<128x384xf32>, vector<8x384xf32> -> vector<8x384xf32>
    %192 = vector.extract_strided_slice %189 {offsets = [0, 0], sizes = [8, 128], strides = [1, 1]} : vector<8x384xf32> to vector<8x128xf32>
    %193 = vector.extract_strided_slice %191 {offsets = [0, 0], sizes = [8, 128], strides = [1, 1]} : vector<8x384xf32> to vector<8x128xf32>
    %194 = arith.addf %192, %193 : vector<8x128xf32>
    %195 = arith.negf %194 : vector<8x128xf32>
    %196 = math.exp %195 : vector<8x128xf32>
    %cst_59 = arith.constant 1.000000e+00 : f32
    %197 = vector.broadcast %cst_59 : f32 to vector<8x128xf32>
    %198 = arith.addf %197, %196 : vector<8x128xf32>
    %199 = arith.divf %197, %198 : vector<8x128xf32>
    %200 = vector.extract_strided_slice %189 {offsets = [0, 128], sizes = [8, 128], strides = [1, 1]} : vector<8x384xf32> to vector<8x128xf32>
    %201 = vector.extract_strided_slice %191 {offsets = [0, 128], sizes = [8, 128], strides = [1, 1]} : vector<8x384xf32> to vector<8x128xf32>
    %202 = arith.addf %200, %201 : vector<8x128xf32>
    %203 = arith.negf %202 : vector<8x128xf32>
    %204 = math.exp %203 : vector<8x128xf32>
    %cst_60 = arith.constant 1.000000e+00 : f32
    %205 = vector.broadcast %cst_60 : f32 to vector<8x128xf32>
    %206 = arith.addf %205, %204 : vector<8x128xf32>
    %207 = arith.divf %205, %206 : vector<8x128xf32>
    %208 = vector.extract_strided_slice %189 {offsets = [0, 256], sizes = [8, 128], strides = [1, 1]} : vector<8x384xf32> to vector<8x128xf32>
    %209 = vector.extract_strided_slice %191 {offsets = [0, 256], sizes = [8, 128], strides = [1, 1]} : vector<8x384xf32> to vector<8x128xf32>
    %c0_61 = arith.constant 0 : index
    %c0_62 = arith.constant 0 : index
    %210 = vector.load %arg5[%c0_61, %c0_62] : memref<1x128xf32, #tpu.memory_space<vmem>>, vector<1x128xf32>
    %211 = vector.broadcast %210 : vector<1x128xf32> to vector<8x128xf32>
    %212 = arith.addf %209, %211 : vector<8x128xf32>
    %213 = arith.mulf %199, %212 : vector<8x128xf32>
    %214 = arith.addf %208, %213 : vector<8x128xf32>
    %215 = math.tanh %214 : vector<8x128xf32>
    %cst_63 = arith.constant 1.000000e+00 : f32
    %216 = vector.broadcast %cst_63 : f32 to vector<8x128xf32>
    %217 = arith.subf %216, %207 : vector<8x128xf32>
    %218 = arith.mulf %217, %215 : vector<8x128xf32>
    %219 = arith.mulf %207, %183 : vector<8x128xf32>
    %220 = arith.addf %218, %219 : vector<8x128xf32>
    %221 = vector.broadcast %185 : i32 to vector<8x1xi32>
    %222 = arith.cmpi slt, %221, %1 : vector<8x1xi32>
    %223 = vector.shape_cast %222 : vector<8x1xi1> to vector<8x1xi1>
    %224 = vector.broadcast %223 : vector<8x1xi1> to vector<8x128xi1>
    %225 = arith.select %224, %220, %183 : vector<8x128xi1>, vector<8x128xf32>
    %c5_i32 = arith.constant 5 : i32
    %c8_i32_64 = arith.constant 8 : i32
    %226 = arith.muli %c0_i32, %c8_i32_64 : i32
    %227 = arith.addi %226, %c5_i32 : i32
    %c8_i32_65 = arith.constant 8 : i32
    %228 = arith.muli %c5_i32, %c8_i32_65 : i32
    %229 = tpu.assume_multiple %228, 8 : i32
    %230 = arith.index_cast %229 : i32 to index
    %c0_66 = arith.constant 0 : index
    %231 = vector.load %arg9[%230, %c0_66] : memref<64x384xf32, #tpu.memory_space<vmem>>, vector<8x384xf32>
    %c0_67 = arith.constant 0 : index
    %c0_68 = arith.constant 0 : index
    %232 = vector.load %arg4[%c0_67, %c0_68] : memref<128x384xf32, #tpu.memory_space<vmem>>, vector<128x384xf32>
    %cst_69 = arith.constant dense<0.000000e+00> : vector<8x384xf32>
    %233 = tpu.matmul %225, %232, %cst_69 {dimension_numbers = #tpu.dot_dimension_numbers<[1], [0], [0], [1], [0, 0, 1, 1], [], []>} : vector<8x128xf32>, vector<128x384xf32>, vector<8x384xf32> -> vector<8x384xf32>
    %234 = vector.extract_strided_slice %231 {offsets = [0, 0], sizes = [8, 128], strides = [1, 1]} : vector<8x384xf32> to vector<8x128xf32>
    %235 = vector.extract_strided_slice %233 {offsets = [0, 0], sizes = [8, 128], strides = [1, 1]} : vector<8x384xf32> to vector<8x128xf32>
    %236 = arith.addf %234, %235 : vector<8x128xf32>
    %237 = arith.negf %236 : vector<8x128xf32>
    %238 = math.exp %237 : vector<8x128xf32>
    %cst_70 = arith.constant 1.000000e+00 : f32
    %239 = vector.broadcast %cst_70 : f32 to vector<8x128xf32>
    %240 = arith.addf %239, %238 : vector<8x128xf32>
    %241 = arith.divf %239, %240 : vector<8x128xf32>
    %242 = vector.extract_strided_slice %231 {offsets = [0, 128], sizes = [8, 128], strides = [1, 1]} : vector<8x384xf32> to vector<8x128xf32>
    %243 = vector.extract_strided_slice %233 {offsets = [0, 128], sizes = [8, 128], strides = [1, 1]} : vector<8x384xf32> to vector<8x128xf32>
    %244 = arith.addf %242, %243 : vector<8x128xf32>
    %245 = arith.negf %244 : vector<8x128xf32>
    %246 = math.exp %245 : vector<8x128xf32>
    %cst_71 = arith.constant 1.000000e+00 : f32
    %247 = vector.broadcast %cst_71 : f32 to vector<8x128xf32>
    %248 = arith.addf %247, %246 : vector<8x128xf32>
    %249 = arith.divf %247, %248 : vector<8x128xf32>
    %250 = vector.extract_strided_slice %231 {offsets = [0, 256], sizes = [8, 128], strides = [1, 1]} : vector<8x384xf32> to vector<8x128xf32>
    %251 = vector.extract_strided_slice %233 {offsets = [0, 256], sizes = [8, 128], strides = [1, 1]} : vector<8x384xf32> to vector<8x128xf32>
    %c0_72 = arith.constant 0 : index
    %c0_73 = arith.constant 0 : index
    %252 = vector.load %arg5[%c0_72, %c0_73] : memref<1x128xf32, #tpu.memory_space<vmem>>, vector<1x128xf32>
    %253 = vector.broadcast %252 : vector<1x128xf32> to vector<8x128xf32>
    %254 = arith.addf %251, %253 : vector<8x128xf32>
    %255 = arith.mulf %241, %254 : vector<8x128xf32>
    %256 = arith.addf %250, %255 : vector<8x128xf32>
    %257 = math.tanh %256 : vector<8x128xf32>
    %cst_74 = arith.constant 1.000000e+00 : f32
    %258 = vector.broadcast %cst_74 : f32 to vector<8x128xf32>
    %259 = arith.subf %258, %249 : vector<8x128xf32>
    %260 = arith.mulf %259, %257 : vector<8x128xf32>
    %261 = arith.mulf %249, %225 : vector<8x128xf32>
    %262 = arith.addf %260, %261 : vector<8x128xf32>
    %263 = vector.broadcast %227 : i32 to vector<8x1xi32>
    %264 = arith.cmpi slt, %263, %1 : vector<8x1xi32>
    %265 = vector.shape_cast %264 : vector<8x1xi1> to vector<8x1xi1>
    %266 = vector.broadcast %265 : vector<8x1xi1> to vector<8x128xi1>
    %267 = arith.select %266, %262, %225 : vector<8x128xi1>, vector<8x128xf32>
    %c6_i32 = arith.constant 6 : i32
    %c8_i32_75 = arith.constant 8 : i32
    %268 = arith.muli %c0_i32, %c8_i32_75 : i32
    %269 = arith.addi %268, %c6_i32 : i32
    %c8_i32_76 = arith.constant 8 : i32
    %270 = arith.muli %c6_i32, %c8_i32_76 : i32
    %271 = tpu.assume_multiple %270, 8 : i32
    %272 = arith.index_cast %271 : i32 to index
    %c0_77 = arith.constant 0 : index
    %273 = vector.load %arg9[%272, %c0_77] : memref<64x384xf32, #tpu.memory_space<vmem>>, vector<8x384xf32>
    %c0_78 = arith.constant 0 : index
    %c0_79 = arith.constant 0 : index
    %274 = vector.load %arg4[%c0_78, %c0_79] : memref<128x384xf32, #tpu.memory_space<vmem>>, vector<128x384xf32>
    %cst_80 = arith.constant dense<0.000000e+00> : vector<8x384xf32>
    %275 = tpu.matmul %267, %274, %cst_80 {dimension_numbers = #tpu.dot_dimension_numbers<[1], [0], [0], [1], [0, 0, 1, 1], [], []>} : vector<8x128xf32>, vector<128x384xf32>, vector<8x384xf32> -> vector<8x384xf32>
    %276 = vector.extract_strided_slice %273 {offsets = [0, 0], sizes = [8, 128], strides = [1, 1]} : vector<8x384xf32> to vector<8x128xf32>
    %277 = vector.extract_strided_slice %275 {offsets = [0, 0], sizes = [8, 128], strides = [1, 1]} : vector<8x384xf32> to vector<8x128xf32>
    %278 = arith.addf %276, %277 : vector<8x128xf32>
    %279 = arith.negf %278 : vector<8x128xf32>
    %280 = math.exp %279 : vector<8x128xf32>
    %cst_81 = arith.constant 1.000000e+00 : f32
    %281 = vector.broadcast %cst_81 : f32 to vector<8x128xf32>
    %282 = arith.addf %281, %280 : vector<8x128xf32>
    %283 = arith.divf %281, %282 : vector<8x128xf32>
    %284 = vector.extract_strided_slice %273 {offsets = [0, 128], sizes = [8, 128], strides = [1, 1]} : vector<8x384xf32> to vector<8x128xf32>
    %285 = vector.extract_strided_slice %275 {offsets = [0, 128], sizes = [8, 128], strides = [1, 1]} : vector<8x384xf32> to vector<8x128xf32>
    %286 = arith.addf %284, %285 : vector<8x128xf32>
    %287 = arith.negf %286 : vector<8x128xf32>
    %288 = math.exp %287 : vector<8x128xf32>
    %cst_82 = arith.constant 1.000000e+00 : f32
    %289 = vector.broadcast %cst_82 : f32 to vector<8x128xf32>
    %290 = arith.addf %289, %288 : vector<8x128xf32>
    %291 = arith.divf %289, %290 : vector<8x128xf32>
    %292 = vector.extract_strided_slice %273 {offsets = [0, 256], sizes = [8, 128], strides = [1, 1]} : vector<8x384xf32> to vector<8x128xf32>
    %293 = vector.extract_strided_slice %275 {offsets = [0, 256], sizes = [8, 128], strides = [1, 1]} : vector<8x384xf32> to vector<8x128xf32>
    %c0_83 = arith.constant 0 : index
    %c0_84 = arith.constant 0 : index
    %294 = vector.load %arg5[%c0_83, %c0_84] : memref<1x128xf32, #tpu.memory_space<vmem>>, vector<1x128xf32>
    %295 = vector.broadcast %294 : vector<1x128xf32> to vector<8x128xf32>
    %296 = arith.addf %293, %295 : vector<8x128xf32>
    %297 = arith.mulf %283, %296 : vector<8x128xf32>
    %298 = arith.addf %292, %297 : vector<8x128xf32>
    %299 = math.tanh %298 : vector<8x128xf32>
    %cst_85 = arith.constant 1.000000e+00 : f32
    %300 = vector.broadcast %cst_85 : f32 to vector<8x128xf32>
    %301 = arith.subf %300, %291 : vector<8x128xf32>
    %302 = arith.mulf %301, %299 : vector<8x128xf32>
    %303 = arith.mulf %291, %267 : vector<8x128xf32>
    %304 = arith.addf %302, %303 : vector<8x128xf32>
    %305 = vector.broadcast %269 : i32 to vector<8x1xi32>
    %306 = arith.cmpi slt, %305, %1 : vector<8x1xi32>
    %307 = vector.shape_cast %306 : vector<8x1xi1> to vector<8x1xi1>
    %308 = vector.broadcast %307 : vector<8x1xi1> to vector<8x128xi1>
    %309 = arith.select %308, %304, %267 : vector<8x128xi1>, vector<8x128xf32>
    %c7_i32 = arith.constant 7 : i32
    %c8_i32_86 = arith.constant 8 : i32
    %310 = arith.muli %c0_i32, %c8_i32_86 : i32
    %311 = arith.addi %310, %c7_i32 : i32
    %c8_i32_87 = arith.constant 8 : i32
    %312 = arith.muli %c7_i32, %c8_i32_87 : i32
    %313 = tpu.assume_multiple %312, 8 : i32
    %314 = arith.index_cast %313 : i32 to index
    %c0_88 = arith.constant 0 : index
    %315 = vector.load %arg9[%314, %c0_88] : memref<64x384xf32, #tpu.memory_space<vmem>>, vector<8x384xf32>
    %c0_89 = arith.constant 0 : index
    %c0_90 = arith.constant 0 : index
    %316 = vector.load %arg4[%c0_89, %c0_90] : memref<128x384xf32, #tpu.memory_space<vmem>>, vector<128x384xf32>
    %cst_91 = arith.constant dense<0.000000e+00> : vector<8x384xf32>
    %317 = tpu.matmul %309, %316, %cst_91 {dimension_numbers = #tpu.dot_dimension_numbers<[1], [0], [0], [1], [0, 0, 1, 1], [], []>} : vector<8x128xf32>, vector<128x384xf32>, vector<8x384xf32> -> vector<8x384xf32>
    %318 = vector.extract_strided_slice %315 {offsets = [0, 0], sizes = [8, 128], strides = [1, 1]} : vector<8x384xf32> to vector<8x128xf32>
    %319 = vector.extract_strided_slice %317 {offsets = [0, 0], sizes = [8, 128], strides = [1, 1]} : vector<8x384xf32> to vector<8x128xf32>
    %320 = arith.addf %318, %319 : vector<8x128xf32>
    %321 = arith.negf %320 : vector<8x128xf32>
    %322 = math.exp %321 : vector<8x128xf32>
    %cst_92 = arith.constant 1.000000e+00 : f32
    %323 = vector.broadcast %cst_92 : f32 to vector<8x128xf32>
    %324 = arith.addf %323, %322 : vector<8x128xf32>
    %325 = arith.divf %323, %324 : vector<8x128xf32>
    %326 = vector.extract_strided_slice %315 {offsets = [0, 128], sizes = [8, 128], strides = [1, 1]} : vector<8x384xf32> to vector<8x128xf32>
    %327 = vector.extract_strided_slice %317 {offsets = [0, 128], sizes = [8, 128], strides = [1, 1]} : vector<8x384xf32> to vector<8x128xf32>
    %328 = arith.addf %326, %327 : vector<8x128xf32>
    %329 = arith.negf %328 : vector<8x128xf32>
    %330 = math.exp %329 : vector<8x128xf32>
    %cst_93 = arith.constant 1.000000e+00 : f32
    %331 = vector.broadcast %cst_93 : f32 to vector<8x128xf32>
    %332 = arith.addf %331, %330 : vector<8x128xf32>
    %333 = arith.divf %331, %332 : vector<8x128xf32>
    %334 = vector.extract_strided_slice %315 {offsets = [0, 256], sizes = [8, 128], strides = [1, 1]} : vector<8x384xf32> to vector<8x128xf32>
    %335 = vector.extract_strided_slice %317 {offsets = [0, 256], sizes = [8, 128], strides = [1, 1]} : vector<8x384xf32> to vector<8x128xf32>
    %c0_94 = arith.constant 0 : index
    %c0_95 = arith.constant 0 : index
    %336 = vector.load %arg5[%c0_94, %c0_95] : memref<1x128xf32, #tpu.memory_space<vmem>>, vector<1x128xf32>
    %337 = vector.broadcast %336 : vector<1x128xf32> to vector<8x128xf32>
    %338 = arith.addf %335, %337 : vector<8x128xf32>
    %339 = arith.mulf %325, %338 : vector<8x128xf32>
    %340 = arith.addf %334, %339 : vector<8x128xf32>
    %341 = math.tanh %340 : vector<8x128xf32>
    %cst_96 = arith.constant 1.000000e+00 : f32
    %342 = vector.broadcast %cst_96 : f32 to vector<8x128xf32>
    %343 = arith.subf %342, %333 : vector<8x128xf32>
    %344 = arith.mulf %343, %341 : vector<8x128xf32>
    %345 = arith.mulf %333, %309 : vector<8x128xf32>
    %346 = arith.addf %344, %345 : vector<8x128xf32>
    %347 = vector.broadcast %311 : i32 to vector<8x1xi32>
    %348 = arith.cmpi slt, %347, %1 : vector<8x1xi32>
    %349 = vector.shape_cast %348 : vector<8x1xi1> to vector<8x1xi1>
    %350 = vector.broadcast %349 : vector<8x1xi1> to vector<8x128xi1>
    %351 = arith.select %350, %346, %309 : vector<8x128xi1>, vector<8x128xf32>
    %c8_i32_97 = arith.constant 8 : i32
    %c1_i32_98 = arith.constant 1 : i32
    %c0_99 = arith.constant 0 : index
    %c0_100 = arith.constant 0 : index
    %352 = vector.load %arg6[%c0_99, %c0_100] : memref<128x128xf32, #tpu.memory_space<vmem>>, vector<128x128xf32>
    %cst_101 = arith.constant dense<0.000000e+00> : vector<8x128xf32>
    %353 = tpu.matmul %351, %352, %cst_101 {dimension_numbers = #tpu.dot_dimension_numbers<[1], [0], [0], [1], [0, 0, 1, 1], [], []>} : vector<8x128xf32>, vector<128x128xf32>, vector<8x128xf32> -> vector<8x128xf32>
    %c0_102 = arith.constant 0 : index
    %c0_103 = arith.constant 0 : index
    %354 = vector.load %arg7[%c0_102, %c0_103] : memref<1x128xf32, #tpu.memory_space<vmem>>, vector<1x128xf32>
    %355 = vector.broadcast %354 : vector<1x128xf32> to vector<8x128xf32>
    %356 = arith.addf %353, %355 : vector<8x128xf32>
    %c0_104 = arith.constant 0 : index
    %c0_105 = arith.constant 0 : index
    %357 = vector.load %arg8[%c0_104, %c0_105] : memref<8x128xf32, #tpu.memory_space<vmem>>, vector<8x128xf32>
    tpu.vector_store %arg8[%c0_104, %c0_105], %356 {strides = array<i32>} : memref<8x128xf32, #tpu.memory_space<vmem>>, vector<8x128xf32>,
    return
  }
  func.func @transform_0(%arg0: i32) -> (i32, i32, i32) {
    %c0_i32 = arith.constant 0 : i32
    %c0_i32_0 = arith.constant 0 : i32
    %c0_i32_1 = arith.constant 0 : i32
    return %arg0, %c0_i32, %c0_i32_0 : i32, i32, i32
  }
  func.func @transform_1(%arg0: i32) -> (i32, i32, i32) {
    %c0_i32 = arith.constant 0 : i32
    %c0_i32_0 = arith.constant 0 : i32
    %c0_i32_1 = arith.constant 0 : i32
    return %arg0, %c0_i32, %c0_i32_0 : i32, i32, i32
  }
  func.func @transform_2(%arg0: i32) -> (i32, i32) {
    %c0_i32 = arith.constant 0 : i32
    %c0_i32_0 = arith.constant 0 : i32
    %c0_i32_1 = arith.constant 0 : i32
    return %c0_i32, %c0_i32_0 : i32, i32
  }
  func.func @transform_3(%arg0: i32) -> (i32, i32) {
    %c0_i32 = arith.constant 0 : i32
    %c0_i32_0 = arith.constant 0 : i32
    %c0_i32_1 = arith.constant 0 : i32
    return %c0_i32, %c0_i32_0 : i32, i32
  }
  func.func @transform_4(%arg0: i32) -> (i32, i32) {
    %c0_i32 = arith.constant 0 : i32
    %c0_i32_0 = arith.constant 0 : i32
    %c0_i32_1 = arith.constant 0 : i32
    return %c0_i32, %c0_i32_0 : i32, i32
  }
  func.func @transform_5(%arg0: i32) -> (i32, i32) {
    %c0_i32 = arith.constant 0 : i32
    %c0_i32_0 = arith.constant 0 : i32
    %c0_i32_1 = arith.constant 0 : i32
    return %c0_i32, %c0_i32_0 : i32, i32
  }
  func.func @transform_6(%arg0: i32) -> (i32, i32) {
    %c0_i32 = arith.constant 0 : i32
    %c0_i32_0 = arith.constant 0 : i32
    %c0_i32_1 = arith.constant 0 : i32
    return %c0_i32, %c0_i32_0 : i32, i32
  }
  func.func @transform_7(%arg0: i32) -> (i32, i32) {
    %c0_i32 = arith.constant 0 : i32
    %c0_i32_0 = arith.constant 0 : i32
    return %arg0, %c0_i32 : i32, i32
  }
}

</mosaic_0001>

<bundles_post_ra>
// kernel: tpu_custom_call.1
= control target key start
LH: loop header
LB: loop body
LE: loop exit
PB: predicated region body
PF: predicated region fallthrough
CT: control target
= control target key end

     0   :  { %12 = vsyncpa [#allocation4], 0  ;;  %s2553_s0 = inlined_call_operand.vmem [shape: s32[1,64,1], index: 0, kind: input, shape index: {}]   ;;  %s2554_s1 = inlined_call_operand.vmem [shape: s32[1,8,1], index: 1, kind: input, shape index: {}]   ;;  %s2555_s2 = inlined_call_operand.hbm [shape: f32[128,384], index: 2, kind: input, shape index: {}]   ;;  %s2556_s3 = inlined_call_operand.hbm [shape: f32[128,384], index: 3, kind: input, shape index: {}]   ;;  %s2557_s4 = inlined_call_operand.vmem [shape: f32[1,128], index: 4, kind: input, shape index: {}]   ;;  %s2558_s5 = inlined_call_operand.hbm [shape: f32[128,128], index: 5, kind: input, shape index: {}]   ;;  %s2559_s6 = inlined_call_operand.vmem [shape: f32[1,128], index: 6, kind: input, shape index: {}]   ;;  %s2560_s7 = inlined_call_operand.hbm [shape: f32[8,128], index: 7, kind: output, shape index: {}]  }
   0x1   :  { %13 = vsyncpa [#allocation7], 0 }
   0x2   :  { %14 = vsyncpa [#allocation5], 0  ;;  %s36_s26 = sshll.u32 %s2556_s3, 4  ;;  %s1712_s27 = smov [#allocation6]   ;;  %s37_s26 = int_to_ptr.hbm [resolvable:$true] %s36_s26 }
   0x3   :  { %s38_s28 = sshll.u32 %s1712_s27, 4  ;;  %s23_s8 = sshll.u32 %s2555_s2, 4  ;;  %s39_s28 = int_to_ptr.vmem [resolvable:$true] %s38_s28  ;;  %s24_s8 = int_to_ptr.hbm [resolvable:$true] %s23_s8 }
   0x4   :  { %s1713_s9 = smov 384   ;;  %s1714_s10 = smov 24  }
   0x5   :  { %44 = dma.hbm_to_vmem [thread:$0]  %s37_s26, 6144, %s39_s28, [#allocation7], %s1713_s9, %s1713_s9, %s1714_s10  }
   0x6   :  { %s1715_s11 = smov [#allocation3]   ;;  %s51_s15 = sshll.u32 %s2558_s5, 4  ;;  %s52_s15 = int_to_ptr.hbm [resolvable:$true] %s51_s15 }
   0x7   :  { %s25_s12 = sshll.u32 %s1715_s11, 4  ;;  %s1716_s3 = smov [#allocation8]   ;;  %s26_s12 = int_to_ptr.vmem [resolvable:$true] %s25_s12 }
   0x8   :  { %31 = dma.hbm_to_vmem [thread:$0]  %s24_s8, 6144, %s26_s12, [#allocation4], %s1713_s9, %s1713_s9, %s1714_s10  }
   0x9   :  { %s53_s16 = sshll.u32 %s1716_s3, 4  ;;  %s1717_s17 = smov 128   ;;  %s54_s16 = int_to_ptr.vmem [resolvable:$true] %s53_s16 }
   0xa   :  { %s1718_s18 = smov 8  }
   0xb   :  { %59 = dma.hbm_to_vmem [thread:$0]  %s52_s15, 2048, %s54_s16, [#allocation7], %s1717_s17, %s1717_s17, %s1718_s18  }
   0xc   :  { %1706 = dma.done.wait [#allocation4], 6144  }
   0xd   :  { %1707 = vsyncadd [#allocation4], 4294961152 }
   0xe   :  { %1708 = dma.done.wait [#allocation7], 8192  }
   0xf   :  { %1709 = vsyncadd [#allocation7], 4294959104  ;;  %v1719_v0 = vmov 0   ;;  %v77_v1 = vld [vmem:[%s2553_s0 + $0x10] sm:$0xff]  ;;  %v75_v2 = vld [vmem:[%s2553_s0] sm:$0xff]  ;;  %s1722_s15 = smov [#allocation9]  }
  0x10   :  { %1477 = vset.pattern.permute.xlu1 %v1719_v0  ;;  %1476 = vset.pattern.permute.xlu0 %v1719_v0  ;;  %v79_v3 = vld [vmem:[%s2553_s0 + $0x20] sm:$0xff]  ;;  %v78_v4 = vld [vmem:[%s2553_s0 + $0x18] sm:$0xff]  ;;  %v76_v5 = vld [vmem:[%s2553_s0 + $0x8] sm:$0xff]  ;;  %s1394_s3 = sshll.u32 %s1722_s15, 4  ;;  %s1396_s18 = sshll.u32 %s2560_s7, 4  ;;  %s1395_s3 = int_to_ptr.vmem [resolvable:$true] %s1394_s3  ;;  %s1397_s18 = int_to_ptr.hbm [resolvable:$true] %s1396_s18 }
  0x11   :  { %1478 = vset.pattern.permute.xlu2 %v1719_v0  ;;  %92 = vperm.xlu1 %1477, %v77_v1   ;;  %v80_v6 = vld [vmem:[%s2553_s0 + $0x28] sm:$0xff]  ;;  %v1795_v8 = vld [vmem:[#allocation6 + $0x150] sm:$0xff]  ;;  %v1798_v9 = vld [vmem:[#allocation6 + $0x138] sm:$0xff] }
  0x12   :  { %86 = vperm.xlu0 %1476, %v75_v2   ;;  %98 = vperm.xlu2 %1478, %v79_v3   ;;  %v1793_v7 = vld [vmem:[#allocation6 + $0x168] sm:$0xff]  ;;  %v1803_v10 = vld [vmem:[%s2554_s1] sm:$0xff]  ;;  %v82_v12 = vld [vmem:[%s2553_s0 + $0x38] sm:$0xff] }
  0x13   :  { %382 = vmatpush.msra.mxu3 %v1793_v7  ;;  %vm494_vm0 = vcmp.gt.s32.totalorder %v1803_v10, 0  ;;  %v1807_v11 = vld [vmem:[#allocation6 + $0x120] sm:$0xff]  ;;  %v81_v13 = vld [vmem:[%s2553_s0 + $0x30] sm:$0xff]  ;;  %v1816_v14 = vld [vmem:[#allocation6 + $0x108] sm:$0xff]  ;;  %vm736_vm1 = vcmp.gt.s32.totalorder %v1803_v10, 2  ;;  %vm615_vm2 = vcmp.gt.s32.totalorder %v1803_v10, 1 }
  0x14   :  { %v178_v15 = vld [vmem:[#allocation3 + $0x168] sm:$0xff]  ;;  %v179_v16 = vld [vmem:[#allocation3 + $0x170] sm:$0xff]  ;;  %v495_v17 = vsel %vm494_vm0, 1, %v1719_v0  ;;  %v180_v18 = vld [vmem:[#allocation3 + $0x178] sm:$0xff]  ;;  %vm857_vm3 = vcmp.gt.s32.totalorder %v1803_v10, 3  ;;  %v737_v29 = vsel %vm736_vm1, 1, %v1719_v0 }
  0x15   :  { %383 = vmatpush.msra.mxu3 %v1795_v8  ;;  %181 = vmatpush.msra.mxu0 %v178_v15  ;;  %v1820_v19 = vld [vmem:[#allocation6 + $0xf0] sm:$0xff]  ;;  %v176_v21 = vld [vmem:[#allocation3 + $0x158] sm:$0xff]  ;;  %v177_v22 = vld [vmem:[#allocation3 + $0x160] sm:$0xff]  ;;  %v616_v30 = vsel %vm615_vm2, 1, %v1719_v0  ;;  %v858_v33 = vsel %vm857_vm3, 1, %v1719_v0  ;;  %vm1099_vm4 = vcmp.gt.s32.totalorder %v1803_v10, 5 }
  0x16   :  { %v175_v20 = vld [vmem:[#allocation3 + $0x150] sm:$0xff]  ;;  %222 = vmatpush.msra.mxu1 %v179_v16  ;;  %v1825_v23 = vld [vmem:[#allocation6 + $0xd8] sm:$0xff]  ;;  %263 = vmatpush.msra.mxu2 %v180_v18  ;;  %v173_v25 = vld [vmem:[#allocation3 + $0x140] sm:$0xff]  ;;  %vm978_vm5 = vcmp.gt.s32.totalorder %v1803_v10, 4  ;;  %vm1220_vm6 = vcmp.gt.s32.totalorder %v1803_v10, 6  ;;  %v1100_v45 = vsel %vm1099_vm4, 1, %v1719_v0 }
  0x17   :  { %384 = vmatpush.msra.mxu3 %v1798_v9  ;;  %v172_v24 = vld [vmem:[#allocation3 + $0x138] sm:$0xff]  ;;  %182 = vmatpush.msra.mxu0 %v175_v20  ;;  %v174_v26 = vld [vmem:[#allocation3 + $0x148] sm:$0xff]  ;;  %v1829_v27 = vld [vmem:[#allocation6 + $0xc0] sm:$0xff]  ;;  %v979_v46 = vsel %vm978_vm5, 1, %v1719_v0  ;;  %v1221_v49 = vsel %vm1220_vm6, 1, %v1719_v0  ;;  %vm1341_vm7 = vcmp.gt.s32.totalorder %v1803_v10, 7 }
  0x18   :  { %223 = vmatpush.msra.mxu1 %v176_v21  ;;  %264 = vmatpush.msra.mxu2 %v177_v22  ;;  %v169_v28 = vld [vmem:[#allocation3 + $0x120] sm:$0xff]  ;;  %v1834_v31 = vld [vmem:[#allocation6 + $0xa8] sm:$0xff]  ;;  %v171_v34 = vld [vmem:[#allocation3 + $0x130] sm:$0xff]  ;;  %v1342_v61 = vsel %vm1341_vm7, 1, %v1719_v0 }
  0x19   :  { %95 = vperm.xlu1 %1477, %v78_v4   ;;  %385 = vmatpush.msra.mxu3 %v1807_v11  ;;  %v170_v32 = vld [vmem:[#allocation3 + $0x128] sm:$0xff]  ;;  %v1838_v35 = vld [vmem:[#allocation6 + $0x90] sm:$0xff]  ;;  %v168_v38 = vld [vmem:[#allocation3 + $0x118] sm:$0xff] }
  0x1a   :  { %89 = vperm.xlu0 %1476, %v76_v5   ;;  %101 = vperm.xlu2 %1478, %v80_v6   ;;  %v166_v36 = vld [vmem:[#allocation3 + $0x108] sm:$0xff]  ;;  %v167_v37 = vld [vmem:[#allocation3 + $0x110] sm:$0xff]  ;;  %v1843_v39 = vld [vmem:[#allocation6 + $0x78] sm:$0xff]  ;;  %v1720_v5 = vmov 0.0  }
  0x1b   :  { %386 = vmatpush.msra.mxu3 %v1816_v14  ;;  %183 = vmatpush.msra.mxu0 %v172_v24  ;;  %v163_v40 = vld [vmem:[#allocation3 + $0xf0] sm:$0xff]  ;;  %v164_v41 = vld [vmem:[#allocation3 + $0xf8] sm:$0xff]  ;;  %v165_v42 = vld [vmem:[#allocation3 + $0x100] sm:$0xff] }
  0x1c   :  { %224 = vmatpush.msra.mxu1 %v173_v25  ;;  %265 = vmatpush.msra.mxu2 %v174_v26  ;;  %v1847_v43 = vld [vmem:[#allocation6 + $0x60] sm:$0xff]  ;;  %v160_v44 = vld [vmem:[#allocation3 + $0xd8] sm:$0xff]  ;;  %v1852_v47 = vld [vmem:[#allocation6 + $0x48] sm:$0xff] }
  0x1d   :  { %387 = vmatpush.msra.mxu3 %v1820_v19  ;;  %184 = vmatpush.msra.mxu0 %v169_v28  ;;  %v161_v48 = vld [vmem:[#allocation3 + $0xe0] sm:$0xff]  ;;  %v162_v50 = vld [vmem:[#allocation3 + $0xe8] sm:$0xff]  ;;  %v1856_v51 = vld [vmem:[#allocation6 + $0x30] sm:$0xff] }
  0x1e   :  { %225 = vmatpush.msra.mxu1 %v170_v32  ;;  %266 = vmatpush.msra.mxu2 %v171_v34  ;;  %v157_v52 = vld [vmem:[#allocation3 + $0xc0] sm:$0xff]  ;;  %v158_v53 = vld [vmem:[#allocation3 + $0xc8] sm:$0xff]  ;;  %v159_v54 = vld [vmem:[#allocation3 + $0xd0] sm:$0xff] }
  0x1f   :  { %388 = vmatpush.msra.mxu3 %v1825_v23  ;;  %185 = vmatpush.msra.mxu0 %v166_v36  ;;  %v1860_v55 = vld [vmem:[#allocation6 + $0x18] sm:$0xff]  ;;  %v154_v56 = vld [vmem:[#allocation3 + $0xa8] sm:$0xff]  ;;  %v155_v57 = vld [vmem:[#allocation3 + $0xb0] sm:$0xff] }
  0x20   :  { %226 = vmatpush.msra.mxu1 %v167_v37  ;;  %267 = vmatpush.msra.mxu2 %v168_v38  ;;  %2571 = vst [vmem:[#allocation13_spill] sm:$0xff] %v1860_v55  ;;  %v156_v58 = vld [vmem:[#allocation3 + $0xb8] sm:$0xff]  ;;  %v1863_v59 = vld [vmem:[#allocation6] sm:$0xff]  ;;  %v151_v60 = vld [vmem:[#allocation3 + $0x90] sm:$0xff] }
  0x21   :  { %107 = vperm.xlu1 %1477, %v82_v12   ;;  %389 = vmatpush.msra.mxu3 %v1829_v27  ;;  %2572 = vst [vmem:[#allocation14_spill] sm:$0xff] %v1863_v59  ;;  %v1867_v62 = vld [vmem:[#allocation6 + $0x170] sm:$0xff]  ;;  %v152_v63 = vld [vmem:[#allocation3 + $0x98] sm:$0xff]  ;;  %v153_v2 = vld [vmem:[#allocation3 + $0xa0] sm:$0xff] }
  0x22   :  { %104 = vperm.xlu0 %1476, %v81_v13   ;;  %497 = vperm.xlu2 %1478, %v495_v17   ;;  %v1870_v1 = vld [vmem:[#allocation6 + $0x158] sm:$0xff]  ;;  %v149_v4 = vld [vmem:[#allocation3 + $0x80] sm:$0xff]  ;;  %v150_v6 = vld [vmem:[#allocation3 + $0x88] sm:$0xff] }
  0x23   :  { %390 = vmatpush.msra.mxu3 %v1834_v31  ;;  %186 = vmatpush.msra.mxu0 %v163_v40  ;;  %v148_v3 = vld [vmem:[#allocation3 + $0x78] sm:$0xff]  ;;  %v1873_v0 = vld [vmem:[#allocation6 + $0x140] sm:$0xff]  ;;  %v146_v12 = vld [vmem:[#allocation3 + $0x68] sm:$0xff] }
  0x24   :  { %227 = vmatpush.msra.mxu1 %v164_v41  ;;  %268 = vmatpush.msra.mxu2 %v165_v42  ;;  %v145_v10 = vld [vmem:[#allocation3 + $0x60] sm:$0xff]  ;;  %v1877_v13 = vld [vmem:[#allocation6 + $0x128] sm:$0xff]  ;;  %v147_v15 = vld [vmem:[#allocation3 + $0x70] sm:$0xff] }
  0x25   :  { %391 = vmatpush.msra.mxu3 %v1838_v35  ;;  %187 = vmatpush.msra.mxu0 %v160_v44  ;;  %v142_v16 = vld [vmem:[#allocation3 + $0x48] sm:$0xff]  ;;  %v143_v17 = vld [vmem:[#allocation3 + $0x50] sm:$0xff]  ;;  %v144_v20 = vld [vmem:[#allocation3 + $0x58] sm:$0xff] }
  0x26   :  { %228 = vmatpush.msra.mxu1 %v161_v48  ;;  %269 = vmatpush.msra.mxu2 %v162_v50  ;;  %v1880_v18 = vld [vmem:[#allocation6 + $0x110] sm:$0xff]  ;;  %v140_v22 = vld [vmem:[#allocation3 + $0x38] sm:$0xff]  ;;  %v141_v25 = vld [vmem:[#allocation3 + $0x40] sm:$0xff] }
  0x27   :  { %392 = vmatpush.msra.mxu3 %v1843_v39  ;;  %188 = vmatpush.msra.mxu0 %v157_v52  ;;  %v139_v21 = vld [vmem:[#allocation3 + $0x30] sm:$0xff]  ;;  %v1883_v24 = vld [vmem:[#allocation6 + $0xf8] sm:$0xff]  ;;  %v137_v28 = vld [vmem:[#allocation3 + $0x20] sm:$0xff] }
  0x28   :  { %229 = vmatpush.msra.mxu1 %v158_v53  ;;  %270 = vmatpush.msra.mxu2 %v159_v54  ;;  %v136_v26 = vld [vmem:[#allocation3 + $0x18] sm:$0xff]  ;;  %v1889_v32 = vld [vmem:[#allocation6 + $0xc8] sm:$0xff]  ;;  %v1898_v36 = vld [vmem:[#allocation6 + $0x80] sm:$0xff] }
  0x29   :  { %739 = vperm.xlu1 %1477, %v737_v29   ;;  %393 = vmatpush.msra.mxu3 %v1847_v43  ;;  %v1886_v29 = vld [vmem:[#allocation6 + $0xe0] sm:$0xff]  ;;  %v1895_v34 = vld [vmem:[#allocation6 + $0x98] sm:$0xff]  ;;  %v1901_v37 = vld [vmem:[#allocation6 + $0x68] sm:$0xff] }
  0x2a   :  { %618 = vperm.xlu0 %1476, %v616_v30   ;;  %860 = vperm.xlu2 %1478, %v858_v33   ;;  %v138_v30 = vld [vmem:[#allocation3 + $0x28] sm:$0xff]  ;;  %v1892_v33 = vld [vmem:[#allocation6 + $0xb0] sm:$0xff]  ;;  %v1907_v40 = vld [vmem:[#allocation6 + $0x38] sm:$0xff] }
  0x2b   :  { %394 = vmatpush.msra.mxu3 %v1852_v47  ;;  %189 = vmatpush.msra.mxu0 %v154_v56  ;;  %v1904_v38 = vld [vmem:[#allocation6 + $0x50] sm:$0xff]  ;;  %v1910_v41 = vld [vmem:[#allocation6 + $0x20] sm:$0xff]  ;;  %v1913_v42 = vld [vmem:[#allocation6 + $0x8] sm:$0xff]  ;;  %v83_v56 = vlaneseq }
  0x2c   :  { %230 = vmatpush.msra.mxu1 %v155_v57  ;;  %271 = vmatpush.msra.mxu2 %v156_v58  ;;  %2573 = vst [vmem:[#allocation15_spill] sm:$0xff] %v1910_v41  ;;  %v133_v44 = vld [vmem:[#allocation3] sm:$0xff]  ;;  %v1919_v48 = vld [vmem:[#allocation6 + $0x178] sm:$0xff]  ;;  %v1935_v50 = vld [vmem:[#allocation6 + $0x148] sm:$0xff] }
  0x2d   :  { %395 = vmatpush.msra.mxu3 %v1856_v51  ;;  %190 = vmatpush.msra.mxu0 %v151_v60  ;;  %2574 = vst [vmem:[#allocation16_spill] sm:$0xff] %v1913_v42  ;;  %v1937_v52 = vld [vmem:[#allocation6 + $0x130] sm:$0xff]  ;;  %v1951_v53 = vld [vmem:[#allocation6 + $0x118] sm:$0xff]  ;;  %v1953_v54 = vld [vmem:[#allocation6 + $0x100] sm:$0xff]  ;;  %v1974_v60 = vand.u32 127, %v83_v56 }
  0x2e   :  { %231 = vmatpush.msra.mxu1 %v152_v63  ;;  %272 = vmatpush.msra.mxu2 %v153_v2  ;;  %v1967_v57 = vld [vmem:[#allocation6 + $0xe8] sm:$0xff]  ;;  %v1969_v58 = vld [vmem:[#allocation6 + $0xd0] sm:$0xff]  ;;  %v1721_v63 = vmov 1.0   ;;  %v1988_v2 = vld [vmem:[#allocation6 + $0xb8] sm:$0xff] }
  0x2f   :  { %396 = vmatpush.msra.mxu3 %v1860_v55  ;;  %191 = vmatpush.msra.mxu0 %v148_v3  ;;  %v1990_v3 = vld [vmem:[#allocation6 + $0xa0] sm:$0xff] }
  0x30   :  { %232 = vmatpush.msra.mxu1 %v149_v4  ;;  %273 = vmatpush.msra.mxu2 %v150_v6  ;;  %v2007_v6 = vld [vmem:[#allocation6 + $0x88] sm:$0xff] }
  0x31   :  { %1102 = vperm.xlu1 %1477, %v1100_v45   ;;  %397 = vmatpush.msra.mxu3 %v1863_v59  ;;  %v134_v45 = vld [vmem:[#allocation3 + $0x8] sm:$0xff] }
  0x32   :  { %981 = vperm.xlu0 %1476, %v979_v46   ;;  %1223 = vperm.xlu2 %1478, %v1221_v49   ;;  %v135_v46 = vld [vmem:[#allocation3 + $0x10] sm:$0xff]  ;;  %v1921_v49 = vld [vmem:[#allocation6 + $0x160] sm:$0xff] }
  0x33   :  { %402 = vmatpush.msrb.mxu3 %v1867_v62  ;;  %192 = vmatpush.msra.mxu0 %v145_v10  ;;  %v2009_v10 = vld [vmem:[#allocation6 + $0x70] sm:$0xff] }
  0x34   :  { %398 = vmatmul.f32.vlgmr.msra.gmra.mxu3 %v1720_v5  ;;  %233 = vmatpush.msra.mxu1 %v146_v12 }
  0x35   :  { %403 = vmatpush.msrb.mxu3 %v1870_v1  ;;  %274 = vmatpush.msra.mxu2 %v147_v15  ;;  %v2026_v15 = vld [vmem:[#allocation6 + $0x58] sm:$0xff] }
  0x36   :  { %193 = vmatpush.msra.mxu0 %v142_v16  ;;  %234 = vmatpush.msra.mxu1 %v143_v17  ;;  %v2028_v16 = vld [vmem:[#allocation6 + $0x40] sm:$0xff] }
  0x37   :  { %404 = vmatpush.msrb.mxu3 %v1873_v0  ;;  %275 = vmatpush.msra.mxu2 %v144_v20  ;;  %v2045_v20 = vld [vmem:[#allocation6 + $0x28] sm:$0xff] }
  0x38   :  { %194 = vmatpush.msra.mxu0 %v139_v21  ;;  %235 = vmatpush.msra.mxu1 %v140_v22  ;;  %2575 = vst [vmem:[#allocation17_spill] sm:$0xff] %v2045_v20  ;;  %v2047_v21 = vld [vmem:[#allocation6 + $0x10] sm:$0xff] }
  0x39   :  { %405 = vmatpush.msrb.mxu3 %v1877_v13  ;;  %276 = vmatpush.msra.mxu2 %v141_v25  ;;  %2576 = vst [vmem:[#allocation18_spill] sm:$0xff] %v2047_v21 }
  0x3a   :  { %1344 = vperm.xlu0 %1476, %v1342_v61   ;;  %195 = vmatpush.msra.mxu0 %v136_v26 }
  0x3b   :  { %406 = vmatpush.msrb.mxu3 %v1880_v18  ;;  %236 = vmatpush.msra.mxu1 %v137_v28 }
  0x3c   :  { %277 = vmatpush.msra.mxu2 %v138_v30  ;;  %196 = vmatpush.msra.mxu0 %v133_v44 }
  0x3d   :  { %407 = vmatpush.msrb.mxu3 %v1883_v24  ;;  %237 = vmatpush.msra.mxu1 %v134_v45 }
  0x3e   :  { %278 = vmatpush.msra.mxu2 %v135_v46  ;;  %422 = vmatpush.msrb.mxu0 %v1919_v48 }
  0x3f   :  { %408 = vmatpush.msrb.mxu3 %v1886_v29  ;;  %507 = vmatpush.msrb.mxu1 %v1793_v7 }
  0x40   :  { %527 = vmatpush.msrb.mxu2 %v1867_v62  ;;  %423 = vmatpush.msrb.mxu0 %v1921_v49 }
  0x41   :  { %409 = vmatpush.msrb.mxu3 %v1889_v32  ;;  %508 = vmatpush.msrb.mxu1 %v1795_v8 }
  0x42   :  { %528 = vmatpush.msrb.mxu2 %v1870_v1  ;;  %424 = vmatpush.msrb.mxu0 %v1935_v50 }
  0x43   :  { %410 = vmatpush.msrb.mxu3 %v1892_v33  ;;  %509 = vmatpush.msrb.mxu1 %v1798_v9 }
  0x44   :  { %529 = vmatpush.msrb.mxu2 %v1873_v0  ;;  %425 = vmatpush.msrb.mxu0 %v1937_v52 }
  0x45   :  { %411 = vmatpush.msrb.mxu3 %v1895_v34  ;;  %510 = vmatpush.msrb.mxu1 %v1807_v11 }
  0x46   :  { %530 = vmatpush.msrb.mxu2 %v1877_v13  ;;  %426 = vmatpush.msrb.mxu0 %v1951_v53 }
  0x47   :  { %412 = vmatpush.msrb.mxu3 %v1898_v36  ;;  %511 = vmatpush.msrb.mxu1 %v1816_v14 }
  0x48   :  { %531 = vmatpush.msrb.mxu2 %v1880_v18  ;;  %427 = vmatpush.msrb.mxu0 %v1953_v54 }
  0x49   :  { %413 = vmatpush.msrb.mxu3 %v1901_v37  ;;  %512 = vmatpush.msrb.mxu1 %v1820_v19 }
  0x4a   :  { %532 = vmatpush.msrb.mxu2 %v1883_v24  ;;  %428 = vmatpush.msrb.mxu0 %v1967_v57 }
  0x4b   :  { %414 = vmatpush.msrb.mxu3 %v1904_v38  ;;  %513 = vmatpush.msrb.mxu1 %v1825_v23 }
  0x4c   :  { %533 = vmatpush.msrb.mxu2 %v1886_v29  ;;  %429 = vmatpush.msrb.mxu0 %v1969_v58 }
  0x4d   :  { %415 = vmatpush.msrb.mxu3 %v1907_v40  ;;  %514 = vmatpush.msrb.mxu1 %v1829_v27 }
  0x4e   :  { %534 = vmatpush.msrb.mxu2 %v1889_v32  ;;  %430 = vmatpush.msrb.mxu0 %v1988_v2 }
  0x4f   :  { %416 = vmatpush.msrb.mxu3 %v1910_v41  ;;  %515 = vmatpush.msrb.mxu1 %v1834_v31 }
  0x50   :  { %535 = vmatpush.msrb.mxu2 %v1892_v33  ;;  %431 = vmatpush.msrb.mxu0 %v1990_v3 }
  0x51   :  { %417 = vmatpush.msrb.mxu3 %v1913_v42  ;;  %516 = vmatpush.msrb.mxu1 %v1838_v35 }
  0x52   :  { %418 = vmatmul.f32.vlgmr.msrb.gmra.mxu3 %v1720_v5  ;;  %536 = vmatpush.msrb.mxu2 %v1895_v34 }
  0x53   :  { %547 = vmatpush.msra.mxu3 %v1919_v48  ;;  %517 = vmatpush.msrb.mxu1 %v1843_v39 }
  0x54   :  { %537 = vmatpush.msrb.mxu2 %v1898_v36  ;;  %432 = vmatpush.msrb.mxu0 %v2007_v6 }
  0x55   :  { %548 = vmatpush.msra.mxu3 %v1921_v49  ;;  %518 = vmatpush.msrb.mxu1 %v1847_v43 }
  0x56   :  { %538 = vmatpush.msrb.mxu2 %v1901_v37  ;;  %433 = vmatpush.msrb.mxu0 %v2009_v10 }
  0x57   :  { %549 = vmatpush.msra.mxu3 %v1935_v50  ;;  %519 = vmatpush.msrb.mxu1 %v1852_v47 }
  0x58   :  { %539 = vmatpush.msrb.mxu2 %v1904_v38  ;;  %434 = vmatpush.msrb.mxu0 %v2026_v15 }
  0x59   :  { %550 = vmatpush.msra.mxu3 %v1937_v52  ;;  %520 = vmatpush.msrb.mxu1 %v1856_v51 }
  0x5a   :  { %540 = vmatpush.msrb.mxu2 %v1907_v40  ;;  %435 = vmatpush.msrb.mxu0 %v2028_v16 }
  0x5b   :  { %551 = vmatpush.msra.mxu3 %v1951_v53  ;;  %521 = vmatpush.msrb.mxu1 %v1860_v55 }
  0x5c   :  { %541 = vmatpush.msrb.mxu2 %v1910_v41  ;;  %436 = vmatpush.msrb.mxu0 %v2045_v20 }
  0x5d   :  { %552 = vmatpush.msra.mxu3 %v1953_v54  ;;  %522 = vmatpush.msrb.mxu1 %v1863_v59 }
  0x5e   :  { %542 = vmatpush.msrb.mxu2 %v1913_v42  ;;  %437 = vmatpush.msrb.mxu0 %v2047_v21 }
  0x5f   :  { %553 = vmatpush.msra.mxu3 %v1967_v57 }
  0x61   :  { %554 = vmatpush.msra.mxu3 %v1969_v58 }
  0x63   :  { %555 = vmatpush.msra.mxu3 %v1988_v2 }
  0x65   :  { %556 = vmatpush.msra.mxu3 %v1990_v3 }
  0x67   :  { %557 = vmatpush.msra.mxu3 %v2007_v6 }
  0x69   :  { %558 = vmatpush.msra.mxu3 %v2009_v10 }
  0x6b   :  { %559 = vmatpush.msra.mxu3 %v2026_v15 }
  0x6c   :  { %v99_v22 = vpop.permute.xlu2 %98 }
  0x6d   :  { %560 = vmatpush.msra.mxu3 %v2028_v16  ;;  %vm113_vm12 = vcmp.eq.s32.totalorder %v99_v22, %v1974_v60 }
  0x6f   :  { %561 = vmatpush.msra.mxu3 %v2045_v20 }
  0x71   :  { %562 = vmatpush.msra.mxu3 %v2047_v21 }
  0x73   :  { %749 = vmatpush.msrb.mxu3 %v1793_v7 }
  0x74   :  { %v102_v25 = vpop.permute.xlu2 %101 }
  0x75   :  { %750 = vmatpush.msrb.mxu3 %v1795_v8  ;;  %vm114_vm13 = vcmp.eq.s32.totalorder %v102_v25, %v1974_v60 }
  0x77   :  { %751 = vmatpush.msrb.mxu3 %v1798_v9 }
  0x79   :  { %752 = vmatpush.msrb.mxu3 %v1807_v11 }
  0x7b   :  { %753 = vmatpush.msrb.mxu3 %v1816_v14 }
  0x7d   :  { %754 = vmatpush.msrb.mxu3 %v1820_v19 }
  0x7f   :  { %755 = vmatpush.msrb.mxu3 %v1825_v23 }
  0x81   :  { %756 = vmatpush.msrb.mxu3 %v1829_v27 }
  0x83   :  { %v93_v12 = vpop.permute.xlu1 %92  ;;  %757 = vmatpush.msrb.mxu3 %v1834_v31 }
  0x84   :  { %v87_v61 = vpop.permute.xlu0 %86  ;;  %vm111_vm10 = vcmp.eq.s32.totalorder %v93_v12, %v1974_v60 }
  0x85   :  { %vm109_vm8 = vcmp.eq.s32.totalorder %v87_v61, %v1974_v60  ;;  %758 = vmatpush.msrb.mxu3 %v1838_v35 }
  0x86   :  { %1422 = vmatmul.msk.f32.vlgmr.msra.gmra.mxu0 %vm109_vm8, %v1721_v63  ;;  %1430 = vmatmul.msk.f32.vlgmr.msra.gmra.mxu1 %vm109_vm8, %v1721_v63 }
  0x87   :  { %1438 = vmatmul.msk.f32.vlgmr.msra.gmra.mxu2 %vm109_vm8, %v1721_v63  ;;  %648 = vmatpush.msra.mxu1 %v1867_v62 }
  0x88   :  { %668 = vmatpush.msra.mxu2 %v1919_v48  ;;  %628 = vmatpush.msra.mxu0 %v1793_v7 }
  0x89   :  { %649 = vmatpush.msra.mxu1 %v1870_v1  ;;  %759 = vmatpush.msrb.mxu3 %v1843_v39 }
  0x8a   :  { %669 = vmatpush.msra.mxu2 %v1921_v49  ;;  %629 = vmatpush.msra.mxu0 %v1795_v8 }
  0x8b   :  { %650 = vmatpush.msra.mxu1 %v1873_v0  ;;  %v96_v17 = vpop.permute.xlu1 %95  ;;  %760 = vmatpush.msrb.mxu3 %v1847_v43 }
  0x8c   :  { %v90_v4 = vpop.permute.xlu0 %89  ;;  %670 = vmatpush.msra.mxu2 %v1935_v50  ;;  %vm112_vm11 = vcmp.eq.s32.totalorder %v96_v17, %v1974_v60  ;;  %630 = vmatpush.msra.mxu0 %v1798_v9 }
  0x8d   :  { %vm110_vm9 = vcmp.eq.s32.totalorder %v90_v4, %v1974_v60  ;;  %651 = vmatpush.msra.mxu1 %v1877_v13  ;;  %761 = vmatpush.msrb.mxu3 %v1852_v47 }
  0x8e   :  { %1423 = vmatmul.msk.f32.gmra.mxu0 %vm110_vm9, %v1721_v63  ;;  %1431 = vmatmul.msk.f32.gmra.mxu1 %vm110_vm9, %v1721_v63 }
  0x8f   :  { %1439 = vmatmul.msk.f32.gmra.mxu2 %vm110_vm9, %v1721_v63  ;;  %652 = vmatpush.msra.mxu1 %v1880_v18 }
  0x90   :  { %671 = vmatpush.msra.mxu2 %v1937_v52  ;;  %631 = vmatpush.msra.mxu0 %v1807_v11 }
  0x91   :  { %653 = vmatpush.msra.mxu1 %v1883_v24  ;;  %762 = vmatpush.msrb.mxu3 %v1856_v51 }
  0x92   :  { %672 = vmatpush.msra.mxu2 %v1951_v53  ;;  %632 = vmatpush.msra.mxu0 %v1816_v14 }
  0x93   :  { %654 = vmatpush.msra.mxu1 %v1886_v29  ;;  %v108_v28 = vpop.permute.xlu1 %107  ;;  %763 = vmatpush.msrb.mxu3 %v1860_v55 }
  0x94   :  { %673 = vmatpush.msra.mxu2 %v1953_v54  ;;  %633 = vmatpush.msra.mxu0 %v1820_v19  ;;  %v105_v26 = vpop.permute.xlu0 %104  ;;  %vm116_vm15 = vcmp.eq.s32.totalorder %v108_v28, %v1974_v60 }
  0x95   :  { %655 = vmatpush.msra.mxu1 %v1889_v32  ;;  %vm115_vm14 = vcmp.eq.s32.totalorder %v105_v26, %v1974_v60  ;;  %764 = vmatpush.msrb.mxu3 %v1863_v59 }
  0x96   :  { %1424 = vmatmul.msk.f32.gmra.mxu0 %vm111_vm10, %v1721_v63  ;;  %1432 = vmatmul.msk.f32.gmra.mxu1 %vm111_vm10, %v1721_v63 }
  0x97   :  { %1440 = vmatmul.msk.f32.gmra.mxu2 %vm111_vm10, %v1721_v63  ;;  %656 = vmatpush.msra.mxu1 %v1892_v33 }
  0x98   :  { %674 = vmatpush.msra.mxu2 %v1967_v57  ;;  %634 = vmatpush.msra.mxu0 %v1825_v23 }
  0x99   :  { %657 = vmatpush.msra.mxu1 %v1895_v34 }
  0x9a   :  { %675 = vmatpush.msra.mxu2 %v1969_v58  ;;  %635 = vmatpush.msra.mxu0 %v1829_v27 }
  0x9b   :  { %658 = vmatpush.msra.mxu1 %v1898_v36 }
  0x9c   :  { %676 = vmatpush.msra.mxu2 %v1988_v2  ;;  %636 = vmatpush.msra.mxu0 %v1834_v31 }
  0x9d   :  { %659 = vmatpush.msra.mxu1 %v1901_v37 }
  0x9e   :  { %1425 = vmatmul.msk.f32.gmra.mxu0 %vm112_vm11, %v1721_v63  ;;  %1433 = vmatmul.msk.f32.gmra.mxu1 %vm112_vm11, %v1721_v63 }
  0x9f   :  { %1441 = vmatmul.msk.f32.gmra.mxu2 %vm112_vm11, %v1721_v63  ;;  %660 = vmatpush.msra.mxu1 %v1904_v38 }
  0xa0   :  { %677 = vmatpush.msra.mxu2 %v1990_v3  ;;  %637 = vmatpush.msra.mxu0 %v1838_v35 }
  0xa1   :  { %661 = vmatpush.msra.mxu1 %v1907_v40 }
  0xa2   :  { %678 = vmatpush.msra.mxu2 %v2007_v6  ;;  %638 = vmatpush.msra.mxu0 %v1843_v39 }
  0xa3   :  { %662 = vmatpush.msra.mxu1 %v1910_v41 }
  0xa4   :  { %679 = vmatpush.msra.mxu2 %v2009_v10  ;;  %639 = vmatpush.msra.mxu0 %v1847_v43 }
  0xa5   :  { %663 = vmatpush.msra.mxu1 %v1913_v42 }
  0xa6   :  { %1426 = vmatmul.msk.f32.gmra.mxu0 %vm113_vm12, %v1721_v63  ;;  %1434 = vmatmul.msk.f32.gmra.mxu1 %vm113_vm12, %v1721_v63 }
  0xa7   :  { %1442 = vmatmul.msk.f32.gmra.mxu2 %vm113_vm12, %v1721_v63  ;;  %640 = vmatpush.msra.mxu0 %v1852_v47 }
  0xa8   :  { %680 = vmatpush.msra.mxu2 %v2026_v15 }
  0xa9   :  { %641 = vmatpush.msra.mxu0 %v1856_v51 }
  0xaa   :  { %681 = vmatpush.msra.mxu2 %v2028_v16 }
  0xab   :  { %642 = vmatpush.msra.mxu0 %v1860_v55 }
  0xac   :  { %682 = vmatpush.msra.mxu2 %v2045_v20 }
  0xad   :  { %643 = vmatpush.msra.mxu0 %v1863_v59 }
  0xae   :  { %1427 = vmatmul.msk.f32.gmra.mxu0 %vm114_vm13, %v1721_v63  ;;  %1435 = vmatmul.msk.f32.gmra.mxu1 %vm114_vm13, %v1721_v63 }
  0xaf   :  { %1443 = vmatmul.msk.f32.gmra.mxu2 %vm114_vm13, %v1721_v63 }
  0xb0   :  { %683 = vmatpush.msra.mxu2 %v2047_v21 }
  0xb6   :  { %1428 = vmatmul.msk.f32.gmra.mxu0 %vm115_vm14, %v1721_v63  ;;  %1436 = vmatmul.msk.f32.gmra.mxu1 %vm115_vm14, %v1721_v63 }
  0xb7   :  { %1444 = vmatmul.msk.f32.gmra.mxu2 %vm115_vm14, %v1721_v63  ;;  %v399_v44 = vpop.f32.mrf.mxu3 }
  0xbe   :  { %1429 = vmatmul.msk.f32.gmra.mxu0 %vm116_vm15, %v1721_v63  ;;  %1437 = vmatmul.msk.f32.gmra.mxu1 %vm116_vm15, %v1721_v63 }
  0xbf   :  { %1445 = vmatmul.msk.f32.gmra.mxu2 %vm116_vm15, %v1721_v63 }
  0xc6   :  { %438 = vmatmul.f32.vlgmr.msrb.gmra.mxu0 %v1720_v5 }
  0xc7   :  { %769 = vmatpush.msrb.mxu0 %v1867_v62 }
  0xc9   :  { %770 = vmatpush.msrb.mxu0 %v1870_v1 }
  0xcb   :  { %771 = vmatpush.msrb.mxu0 %v1873_v0 }
  0xcd   :  { %772 = vmatpush.msrb.mxu0 %v1877_v13 }
  0xcf   :  { %773 = vmatpush.msrb.mxu0 %v1880_v18 }
  0xd1   :  { %774 = vmatpush.msrb.mxu0 %v1883_v24 }
  0xd3   :  { %775 = vmatpush.msrb.mxu0 %v1886_v29 }
  0xd5   :  { %776 = vmatpush.msrb.mxu0 %v1889_v32  ;;  %v419_v61 = vpop.f32.mrf.mxu3 }
  0xd7   :  { %777 = vmatpush.msrb.mxu0 %v1892_v33 }
  0xd9   :  { %778 = vmatpush.msrb.mxu0 %v1895_v34 }
  0xdb   :  { %779 = vmatpush.msrb.mxu0 %v1898_v36 }
  0xdd   :  { %780 = vmatpush.msrb.mxu0 %v1901_v37 }
  0xdf   :  { %781 = vmatpush.msrb.mxu0 %v1904_v38 }
  0xe1   :  { %782 = vmatpush.msrb.mxu0 %v1907_v40 }
  0xe3   :  { %783 = vmatpush.msrb.mxu0 %v1910_v41 }
  0xe5   :  { %784 = vmatpush.msrb.mxu0 %v1913_v42 }
 0x103   :  { %v198_v5 = vpop.f32.mrf.mxu0  ;;  %v239_v60 = vpop.f32.mrf.mxu1 }
 0x104   :  { %v442_v46 = vadd.f32 %v399_v44, %v198_v5  ;;  %v462_v63 = vadd.f32 %v419_v61, %v239_v60 }
 0x106   :  { %v1446_v56 = vmul.f32 -1.442695, %v442_v46  ;;  %v1447_v12 = vmul.f32 -1.442695, %v462_v63 }
 0x108   :  { %1481 = vpow2.f32 %v1446_v56 }
 0x109   :  { %1483 = vpow2.f32 %v1447_v12 }
 0x10b   :  { %v2129_v30 = vpop.f32.mrf.mxu0 }
 0x10c   :  { %2577 = vst [vmem:[#allocation19_spill] sm:$0xff] %v2129_v30 }
 0x10e   :  { %v1482_v17 = vpop.eup %1481 }
 0x10f   :  { %v446_v25 = vadd.f32 1.0, %v1482_v17  ;;  %v1484_v26 = vpop.eup %1483 }
 0x110   :  { %v466_v30 = vadd.f32 1.0, %v1484_v26  ;;  %v2146_v26 = vld [vmem:[%s2557_s4] ss:$0 sm:$0xff] }
 0x111   :  { %1485 = vrcp.f32 %v446_v25  ;;  %v458_v17 = vand.u32 2147483648, %v446_v25  ;;  %vm452_vm1 = vweird.f32 %v446_v25 }
 0x112   :  { %1487 = vrcp.f32 %v466_v30  ;;  %v478_v59 = vand.u32 2147483648, %v466_v30  ;;  %vm472_vm5 = vweird.f32 %v466_v30  ;;  %v476_v21 = vand.u32 2147483647, %v466_v30 }
 0x113   :  { %v2131_v45 = vpop.f32.mrf.mxu0 }
 0x114   :  { %2578 = vst [vmem:[#allocation20_spill] sm:$0xff] %v2131_v45  ;;  %vm477_vm7 = vcmp.eq.f32.partialorder %v476_v21, 8.507059e+37 }
 0x117   :  { %v1486_v45 = vpop.eup %1485 }
 0x118   :  { %v448_v5 = vmul.f32 %v1486_v45, %v446_v25  ;;  %v1488_v46 = vpop.eup %1487  ;;  %vm453_vm0 = vweird.f32 %v1486_v45 }
 0x119   :  { %v468_v61 = vmul.f32 %v1488_v46, %v466_v30  ;;  %vm454_vm2 = vmor %vm452_vm1, %vm453_vm0  ;;  %vm473_vm4 = vweird.f32 %v1488_v46 }
 0x11a   :  { %v449_v60 = vsub.f32 1.0, %v448_v5  ;;  %v459_v5 = vor.u32 1.1754944e-38, %v458_v17  ;;  %vm474_vm6 = vmor %vm472_vm5, %vm473_vm4 }
 0x11b   :  { %v2133_v4 = vpop.f32.mrf.mxu0  ;;  %v469_v12 = vsub.f32 1.0, %v468_v61 }
 0x11c   :  { %2579 = vst [vmem:[#allocation21_spill] sm:$0xff] %v2133_v4  ;;  %v450_v56 = vmul.f32 %v1486_v45, %v449_v60 }
 0x11e   :  { %v451_v4 = vadd.f32 %v1486_v45, %v450_v56 }
 0x123   :  { %v2135_v22 = vpop.f32.mrf.mxu0 }
 0x124   :  { %2580 = vst [vmem:[#allocation22_spill] sm:$0xff] %v2135_v22  ;;  %v456_v22 = vand.u32 2147483647, %v446_v25  ;;  %v280_v25 = vpop.f32.mrf.mxu2 }
 0x126   :  { %vm457_vm3 = vcmp.eq.f32.partialorder %v456_v22, 8.507059e+37 }
 0x12b   :  { %v2137_v28 = vpop.f32.mrf.mxu0 }
 0x12c   :  { %2581 = vst [vmem:[#allocation23_spill] sm:$0xff] %v2137_v28  ;;  %v470_v28 = vmul.f32 %v1488_v46, %v469_v12  ;;  %v479_v12 = vor.u32 1.1754944e-38, %v478_v59 }
 0x12e   :  { %v471_v61 = vadd.f32 %v1488_v46, %v470_v28 }
 0x130   :  { %v475_v55 = vsel %vm474_vm6, %v1488_v46, %v471_v61 }
 0x133   :  { %v2139_v44 = vpop.f32.mrf.mxu0 }
 0x134   :  { %2582 = vst [vmem:[#allocation24_spill] sm:$0xff] %v2139_v44  ;;  %v455_v44 = vsel %vm454_vm2, %v1486_v45, %v451_v4  ;;  %v480_v45 = vsel %vm477_vm7, %v479_v12, %v475_v55 }
 0x135   :  { %v490_v4 = vsub.f32 1.0, %v480_v45  ;;  %v492_v20 = vmul.f32 0.0, %v480_v45 }
 0x13b   :  { %v2141_v63 = vpop.f32.mrf.mxu0 }
 0x13c   :  { %2583 = vst [vmem:[#allocation25_spill] sm:$0xff] %v2141_v63  ;;  %v460_v63 = vsel %vm457_vm3, %v459_v5, %v455_v44 }
 0x143   :  { %v439_v42 = vpop.f32.mrf.mxu0 }
 0x144   :  { %v486_v60 = vadd.f32 %v2146_v26, %v439_v42  ;;  %v498_v42 = vpop.permute.xlu2 %497 }
 0x145   :  { %vm499_vm8 = vcmp.eq.s32.totalorder %v498_v42, 1 }
 0x146   :  { %v487_v56 = vmul.f32 %v486_v60, %v460_v63  ;;  %v2595_v63 = vld [vmem:[#allocation19_spill] sm:$0xff] }
 0x148   :  { %v488_v41 = vadd.f32 %v487_v56, %v280_v25 }
 0x14a   :  { %1489 = vtanh.f32 %v488_v41 }
 0x150   :  { %v1490_v17 = vpop.eup %1489 }
 0x151   :  { %v491_v22 = vmul.f32 %v1490_v17, %v490_v4 }
 0x153   :  { %v493_v44 = vadd.f32 %v492_v20, %v491_v22 }
 0x155   :  { %1448 = vmatmul.msk.f32.vlgmr.msrb.gmra.mxu1 %vm499_vm8, %v493_v44  ;;  %1449 = vmatmul.msk.f32.vlgmr.msrb.gmra.mxu2 %vm499_vm8, %v493_v44  ;;  %v2149_v28 = vsel %vm499_vm8, %v493_v44, 0.0 }
 0x156   :  { %1450 = vmatmul.msk.f32.vlgmr.msra.gmra.mxu3 %vm499_vm8, %v493_v44  ;;  %789 = vmatpush.msrb.mxu1 %v1919_v48 }
 0x157   :  { %870 = vmatpush.msrb.mxu2 %v1793_v7  ;;  %890 = vmatpush.msra.mxu3 %v1867_v62  ;;  %v2584_v7 = vld [vmem:[#allocation17_spill] sm:$0xff] }
 0x158   :  { %790 = vmatpush.msrb.mxu1 %v1921_v49 }
 0x159   :  { %871 = vmatpush.msrb.mxu2 %v1795_v8  ;;  %891 = vmatpush.msra.mxu3 %v1870_v1  ;;  %v2585_v8 = vld [vmem:[#allocation13_spill] sm:$0xff] }
 0x15a   :  { %791 = vmatpush.msrb.mxu1 %v1935_v50 }
 0x15b   :  { %872 = vmatpush.msrb.mxu2 %v1798_v9  ;;  %892 = vmatpush.msra.mxu3 %v1873_v0  ;;  %v2586_v9 = vld [vmem:[#allocation15_spill] sm:$0xff] }
 0x15c   :  { %792 = vmatpush.msrb.mxu1 %v1937_v52 }
 0x15d   :  { %873 = vmatpush.msrb.mxu2 %v1807_v11  ;;  %893 = vmatpush.msra.mxu3 %v1877_v13  ;;  %v2587_v11 = vld [vmem:[#allocation18_spill] sm:$0xff] }
 0x15e   :  { %793 = vmatpush.msrb.mxu1 %v1951_v53 }
 0x15f   :  { %874 = vmatpush.msrb.mxu2 %v1816_v14  ;;  %894 = vmatpush.msra.mxu3 %v1880_v18  ;;  %v2588_v14 = vld [vmem:[#allocation14_spill] sm:$0xff] }
 0x160   :  { %794 = vmatpush.msrb.mxu1 %v1953_v54 }
 0x161   :  { %875 = vmatpush.msrb.mxu2 %v1820_v19  ;;  %895 = vmatpush.msra.mxu3 %v1883_v24  ;;  %v2589_v19 = vld [vmem:[#allocation16_spill] sm:$0xff] }
 0x162   :  { %795 = vmatpush.msrb.mxu1 %v1967_v57 }
 0x163   :  { %876 = vmatpush.msrb.mxu2 %v1825_v23  ;;  %896 = vmatpush.msra.mxu3 %v1886_v29  ;;  %v242_v23 = vpop.f32.mrf.mxu1 }
 0x164   :  { %796 = vmatpush.msrb.mxu1 %v1969_v58 }
 0x165   :  { %877 = vmatpush.msrb.mxu2 %v1829_v27  ;;  %897 = vmatpush.msra.mxu3 %v1889_v32  ;;  %v283_v27 = vpop.f32.mrf.mxu2 }
 0x166   :  { %797 = vmatpush.msrb.mxu1 %v1988_v2 }
 0x167   :  { %878 = vmatpush.msrb.mxu2 %v1834_v31  ;;  %898 = vmatpush.msra.mxu3 %v1892_v33 }
 0x168   :  { %798 = vmatpush.msrb.mxu1 %v1990_v3 }
 0x169   :  { %879 = vmatpush.msrb.mxu2 %v1838_v35  ;;  %899 = vmatpush.msra.mxu3 %v1895_v34 }
 0x16a   :  { %799 = vmatpush.msrb.mxu1 %v2007_v6 }
 0x16b   :  { %880 = vmatpush.msrb.mxu2 %v1843_v39  ;;  %900 = vmatpush.msra.mxu3 %v1898_v36  ;;  %v2199_v31 = vpop.f32.mrf.mxu1 }
 0x16c   :  { %800 = vmatpush.msrb.mxu1 %v2009_v10 }
 0x16d   :  { %881 = vmatpush.msrb.mxu2 %v1847_v43  ;;  %901 = vmatpush.msra.mxu3 %v1901_v37  ;;  %v2201_v35 = vpop.f32.mrf.mxu2 }
 0x16e   :  { %801 = vmatpush.msrb.mxu1 %v2026_v15 }
 0x16f   :  { %882 = vmatpush.msrb.mxu2 %v1852_v47  ;;  %902 = vmatpush.msra.mxu3 %v1904_v38 }
 0x170   :  { %802 = vmatpush.msrb.mxu1 %v2028_v16 }
 0x171   :  { %883 = vmatpush.msrb.mxu2 %v1856_v51  ;;  %903 = vmatpush.msra.mxu3 %v1907_v40 }
 0x172   :  { %803 = vmatpush.msrb.mxu1 %v2584_v7 }
 0x173   :  { %884 = vmatpush.msrb.mxu2 %v2585_v8  ;;  %904 = vmatpush.msra.mxu3 %v2586_v9  ;;  %v2203_v39 = vpop.f32.mrf.mxu1 }
 0x174   :  { %804 = vmatpush.msrb.mxu1 %v2587_v11 }
 0x175   :  { %885 = vmatpush.msrb.mxu2 %v2588_v14  ;;  %905 = vmatpush.msra.mxu3 %v2589_v19  ;;  %v2205_v43 = vpop.f32.mrf.mxu2 }
 0x17b   :  { %v2207_v47 = vpop.f32.mrf.mxu1 }
 0x17d   :  { %v2209_v51 = vpop.f32.mrf.mxu2 }
 0x183   :  { %v2211_v55 = vpop.f32.mrf.mxu1 }
 0x185   :  { %v2213_v59 = vpop.f32.mrf.mxu2 }
 0x186   :  { %2590 = vst [vmem:[#allocation17_spill] sm:$0xff] %v2213_v59 }
 0x18b   :  { %v2215_v41 = vpop.f32.mrf.mxu1 }
 0x18c   :  { %2591 = vst [vmem:[#allocation13_spill] sm:$0xff] %v2215_v41 }
 0x18d   :  { %v2217_v20 = vpop.f32.mrf.mxu2 }
 0x18e   :  { %2592 = vst [vmem:[#allocation15_spill] sm:$0xff] %v2217_v20 }
 0x193   :  { %v2219_v21 = vpop.f32.mrf.mxu1 }
 0x194   :  { %2593 = vst [vmem:[#allocation18_spill] sm:$0xff] %v2219_v21 }
 0x195   :  { %v2221_v30 = vpop.f32.mrf.mxu2 }
 0x196   :  { %2594 = vst [vmem:[#allocation14_spill] sm:$0xff] %v2221_v30 }
 0x1d2   :  { %v524_v46 = vpop.f32.mrf.mxu1 }
 0x1d3   :  { %v567_v5 = vadd.f32 %v524_v46, %v2595_v63 }
 0x1d5   :  { %v1451_v60 = vmul.f32 -1.442695, %v567_v5 }
 0x1d7   :  { %1491 = vpow2.f32 %v1451_v60 }
 0x1d8   :  { %v544_v61 = vpop.f32.mrf.mxu2 }
 0x1d9   :  { %v587_v56 = vadd.f32 %v544_v61, %v242_v23  ;;  %v564_v63 = vpop.f32.mrf.mxu3 }
 0x1db   :  { %v1452_v25 = vmul.f32 -1.442695, %v587_v56 }
 0x1dd   :  { %v1492_v12 = vpop.eup %1491  ;;  %1493 = vpow2.f32 %v1452_v25  ;;  %v607_v25 = vadd.f32 %v2146_v26, %v564_v63  ;;  %v619_v63 = vpop.permute.xlu0 %618 }
 0x1de   :  { %v571_v45 = vadd.f32 1.0, %v1492_v12  ;;  %vm620_vm1 = vcmp.eq.s32.totalorder %v619_v63, 1 }
 0x1e0   :  { %1495 = vrcp.f32 %v571_v45  ;;  %v583_v8 = vand.u32 2147483648, %v571_v45  ;;  %v581_v30 = vand.u32 2147483647, %v571_v45  ;;  %vm577_vm10 = vweird.f32 %v571_v45 }
 0x1e2   :  { %v584_v23 = vor.u32 1.1754944e-38, %v583_v8  ;;  %vm582_vm12 = vcmp.eq.f32.partialorder %v581_v30, 8.507059e+37 }
 0x1e3   :  { %v1494_v4 = vpop.eup %1493 }
 0x1e4   :  { %v591_v17 = vadd.f32 1.0, %v1494_v4 }
 0x1e6   :  { %v1496_v22 = vpop.eup %1495  ;;  %1497 = vrcp.f32 %v591_v17  ;;  %v603_v4 = vand.u32 2147483648, %v591_v17  ;;  %vm597_vm14 = vweird.f32 %v591_v17 }
 0x1e7   :  { %v573_v42 = vmul.f32 %v1496_v22, %v571_v45  ;;  %vm578_vm9 = vweird.f32 %v1496_v22 }
 0x1e8   :  { %vm579_vm11 = vmor %vm577_vm10, %vm578_vm9  ;;  %v604_v59 = vor.u32 1.1754944e-38, %v603_v4 }
 0x1e9   :  { %v574_v44 = vsub.f32 1.0, %v573_v42 }
 0x1eb   :  { %v575_v14 = vmul.f32 %v1496_v22, %v574_v44  ;;  %v601_v44 = vand.u32 2147483647, %v591_v17 }
 0x1ec   :  { %v1498_v46 = vpop.eup %1497 }
 0x1ed   :  { %v593_v5 = vmul.f32 %v1498_v46, %v591_v17  ;;  %v576_v60 = vadd.f32 %v1496_v22, %v575_v14  ;;  %vm598_vm13 = vweird.f32 %v1498_v46  ;;  %vm602_vm0 = vcmp.eq.f32.partialorder %v601_v44, 8.507059e+37 }
 0x1ee   :  { %vm599_vm15 = vmor %vm597_vm14, %vm598_vm13 }
 0x1ef   :  { %v594_v61 = vsub.f32 1.0, %v593_v5  ;;  %v580_v56 = vsel %vm579_vm11, %v1496_v22, %v576_v60 }
 0x1f0   :  { %v585_v12 = vsel %vm582_vm12, %v584_v23, %v580_v56 }
 0x1f1   :  { %v595_v21 = vmul.f32 %v1498_v46, %v594_v61  ;;  %v608_v42 = vmul.f32 %v607_v25, %v585_v12 }
 0x1f3   :  { %v609_v20 = vadd.f32 %v608_v42, %v283_v27  ;;  %v596_v41 = vadd.f32 %v1498_v46, %v595_v21  ;;  %v2233_v27 = vld [vmem:[#allocation6 + $0x168] sm:$0xff]  ;;  %v2596_v21 = vld [vmem:[#allocation20_spill] sm:$0xff] }
 0x1f5   :  { %1499 = vtanh.f32 %v609_v20  ;;  %v600_v45 = vsel %vm599_vm15, %v1498_v46, %v596_v41  ;;  %v2248_v41 = vld [vmem:[#allocation6 + $0x120] sm:$0xff] }
 0x1f6   :  { %v605_v8 = vsel %vm602_vm0, %v604_v59, %v600_v45  ;;  %v2238_v59 = vld [vmem:[#allocation6 + $0x150] sm:$0xff] }
 0x1f7   :  { %v613_v22 = vmul.f32 %v605_v8, %v2149_v28  ;;  %v611_v30 = vsub.f32 1.0, %v605_v8 }
 0x1fb   :  { %v1500_v14 = vpop.eup %1499 }
 0x1fc   :  { %v612_v5 = vmul.f32 %v1500_v14, %v611_v30 }
 0x1fe   :  { %v614_v60 = vadd.f32 %v613_v22, %v612_v5 }
 0x200   :  { %v2227_v23 = vsel %vm620_vm1, %v614_v60, %v2149_v28  ;;  %v2243_v28 = vld [vmem:[#allocation6 + $0x138] sm:$0xff] }
 0x201   :  { %644 = vmatmul.f32.vlgmr.msra.gmra.mxu0 %v2227_v23  ;;  %664 = vmatmul.f32.vlgmr.msra.gmra.mxu1 %v2227_v23 }
 0x202   :  { %684 = vmatmul.f32.vlgmr.msra.gmra.mxu2 %v2227_v23  ;;  %910 = vmatpush.msra.mxu0 %v1919_v48 }
 0x203   :  { %991 = vmatpush.msra.mxu1 %v2233_v27  ;;  %1011 = vmatpush.msra.mxu2 %v1867_v62  ;;  %v2253_v62 = vld [vmem:[#allocation6 + $0x108] sm:$0xff] }
 0x204   :  { %911 = vmatpush.msra.mxu0 %v1921_v49 }
 0x205   :  { %992 = vmatpush.msra.mxu1 %v2238_v59  ;;  %1012 = vmatpush.msra.mxu2 %v1870_v1  ;;  %v2258_v1 = vld [vmem:[#allocation6 + $0xf0] sm:$0xff] }
 0x206   :  { %912 = vmatpush.msra.mxu0 %v1935_v50 }
 0x207   :  { %993 = vmatpush.msra.mxu1 %v2243_v28  ;;  %1013 = vmatpush.msra.mxu2 %v1873_v0  ;;  %v2263_v0 = vld [vmem:[#allocation6 + $0xd8] sm:$0xff] }
 0x208   :  { %913 = vmatpush.msra.mxu0 %v1937_v52 }
 0x209   :  { %994 = vmatpush.msra.mxu1 %v2248_v41  ;;  %1014 = vmatpush.msra.mxu2 %v1877_v13  ;;  %v2268_v13 = vld [vmem:[#allocation6 + $0xc0] sm:$0xff] }
 0x20a   :  { %914 = vmatpush.msra.mxu0 %v1951_v53 }
 0x20b   :  { %995 = vmatpush.msra.mxu1 %v2253_v62  ;;  %1015 = vmatpush.msra.mxu2 %v1880_v18  ;;  %v2273_v18 = vld [vmem:[#allocation6 + $0xa8] sm:$0xff] }
 0x20c   :  { %915 = vmatpush.msra.mxu0 %v1953_v54 }
 0x20d   :  { %996 = vmatpush.msra.mxu1 %v2258_v1  ;;  %1016 = vmatpush.msra.mxu2 %v1883_v24  ;;  %v2278_v24 = vld [vmem:[#allocation6 + $0x90] sm:$0xff] }
 0x20e   :  { %916 = vmatpush.msra.mxu0 %v1967_v57 }
 0x20f   :  { %997 = vmatpush.msra.mxu1 %v2263_v0  ;;  %1017 = vmatpush.msra.mxu2 %v1886_v29  ;;  %v2283_v29 = vld [vmem:[#allocation6 + $0x78] sm:$0xff] }
 0x210   :  { %917 = vmatpush.msra.mxu0 %v1969_v58 }
 0x211   :  { %998 = vmatpush.msra.mxu1 %v2268_v13  ;;  %1018 = vmatpush.msra.mxu2 %v1889_v32  ;;  %v2288_v32 = vld [vmem:[#allocation6 + $0x60] sm:$0xff] }
 0x212   :  { %918 = vmatpush.msra.mxu0 %v1988_v2 }
 0x213   :  { %999 = vmatpush.msra.mxu1 %v2273_v18  ;;  %1019 = vmatpush.msra.mxu2 %v1892_v33  ;;  %v2293_v33 = vld [vmem:[#allocation6 + $0x48] sm:$0xff] }
 0x214   :  { %919 = vmatpush.msra.mxu0 %v1990_v3 }
 0x215   :  { %1000 = vmatpush.msra.mxu1 %v2278_v24  ;;  %1020 = vmatpush.msra.mxu2 %v1895_v34  ;;  %v2298_v34 = vld [vmem:[#allocation6 + $0x30] sm:$0xff] }
 0x216   :  { %920 = vmatpush.msra.mxu0 %v2007_v6 }
 0x217   :  { %1001 = vmatpush.msra.mxu1 %v2283_v29  ;;  %1021 = vmatpush.msra.mxu2 %v1898_v36  ;;  %v2303_v36 = vld [vmem:[#allocation6 + $0x18] sm:$0xff] }
 0x218   :  { %921 = vmatpush.msra.mxu0 %v2009_v10 }
 0x219   :  { %1002 = vmatpush.msra.mxu1 %v2288_v32  ;;  %1022 = vmatpush.msra.mxu2 %v1901_v37  ;;  %v2308_v37 = vld [vmem:[#allocation6] sm:$0xff] }
 0x21a   :  { %922 = vmatpush.msra.mxu0 %v2026_v15 }
 0x21b   :  { %1003 = vmatpush.msra.mxu1 %v2293_v33  ;;  %1023 = vmatpush.msra.mxu2 %v1904_v38 }
 0x21c   :  { %923 = vmatpush.msra.mxu0 %v2028_v16 }
 0x21d   :  { %1004 = vmatpush.msra.mxu1 %v2298_v34  ;;  %1024 = vmatpush.msra.mxu2 %v1907_v40 }
 0x21e   :  { %924 = vmatpush.msra.mxu0 %v2584_v7 }
 0x21f   :  { %1005 = vmatpush.msra.mxu1 %v2303_v36  ;;  %1025 = vmatpush.msra.mxu2 %v2586_v9 }
 0x220   :  { %925 = vmatpush.msra.mxu0 %v2587_v11 }
 0x221   :  { %1006 = vmatpush.msra.mxu1 %v2308_v37  ;;  %1026 = vmatpush.msra.mxu2 %v2589_v19 }
 0x27e   :  { %v645_v38 = vpop.f32.mrf.mxu0  ;;  %v665_v20 = vpop.f32.mrf.mxu1 }
 0x27f   :  { %v688_v40 = vadd.f32 %v645_v38, %v2596_v21  ;;  %v708_v17 = vadd.f32 %v665_v20, %v2199_v31 }
 0x281   :  { %v1453_v46 = vmul.f32 -1.442695, %v688_v40  ;;  %v1454_v61 = vmul.f32 -1.442695, %v708_v17 }
 0x283   :  { %1501 = vpow2.f32 %v1453_v46 }
 0x284   :  { %1503 = vpow2.f32 %v1454_v61 }
 0x285   :  { %v685_v63 = vpop.f32.mrf.mxu2 }
 0x286   :  { %v728_v20 = vadd.f32 %v2146_v26, %v685_v63  ;;  %v2597_v63 = vld [vmem:[#allocation21_spill] sm:$0xff] }
 0x289   :  { %v1502_v56 = vpop.eup %1501 }
 0x28a   :  { %v1504_v9 = vpop.eup %1503  ;;  %v692_v25 = vadd.f32 1.0, %v1502_v56 }
 0x28b   :  { %v712_v12 = vadd.f32 1.0, %v1504_v9 }
 0x28c   :  { %1505 = vrcp.f32 %v692_v25  ;;  %v704_v22 = vand.u32 2147483648, %v692_v25  ;;  %v702_v31 = vand.u32 2147483647, %v692_v25  ;;  %vm698_vm3 = vweird.f32 %v692_v25 }
 0x28d   :  { %1507 = vrcp.f32 %v712_v12  ;;  %v724_v17 = vand.u32 2147483648, %v712_v12  ;;  %vm718_vm7 = vweird.f32 %v712_v12  ;;  %v722_v61 = vand.u32 2147483647, %v712_v12 }
 0x28e   :  { %v705_v60 = vor.u32 1.1754944e-38, %v704_v22  ;;  %vm703_vm5 = vcmp.eq.f32.partialorder %v702_v31, 8.507059e+37 }
 0x28f   :  { %vm723_vm9 = vcmp.eq.f32.partialorder %v722_v61, 8.507059e+37 }
 0x292   :  { %v1506_v4 = vpop.eup %1505 }
 0x293   :  { %v1508_v42 = vpop.eup %1507  ;;  %v694_v44 = vmul.f32 %v1506_v4, %v692_v25  ;;  %vm699_vm2 = vweird.f32 %v1506_v4 }
 0x294   :  { %v714_v19 = vmul.f32 %v1508_v42, %v712_v12  ;;  %vm700_vm4 = vmor %vm698_vm3, %vm699_vm2  ;;  %vm719_vm6 = vweird.f32 %v1508_v42  ;;  %v2335_v12 = vld [vmem:[#allocation6 + $0x140] sm:$0xff] }
 0x295   :  { %v695_v45 = vsub.f32 1.0, %v694_v44  ;;  %vm720_vm8 = vmor %vm718_vm7, %vm719_vm6  ;;  %v725_v44 = vor.u32 1.1754944e-38, %v724_v17 }
 0x296   :  { %v715_v8 = vsub.f32 1.0, %v714_v19 }
 0x297   :  { %v696_v30 = vmul.f32 %v1506_v4, %v695_v45  ;;  %v740_v45 = vpop.permute.xlu1 %739 }
 0x298   :  { %v716_v14 = vmul.f32 %v1508_v42, %v715_v8  ;;  %vm741_vm10 = vcmp.eq.s32.totalorder %v740_v45, 1 }
 0x299   :  { %v697_v5 = vadd.f32 %v1506_v4, %v696_v30 }
 0x29a   :  { %v717_v21 = vadd.f32 %v1508_v42, %v716_v14 }
 0x29b   :  { %v701_v38 = vsel %vm700_vm4, %v1506_v4, %v697_v5 }
 0x29c   :  { %v706_v40 = vsel %vm703_vm5, %v705_v60, %v701_v38  ;;  %v721_v9 = vsel %vm720_vm8, %v1508_v42, %v717_v21 }
 0x29d   :  { %v729_v46 = vmul.f32 %v728_v20, %v706_v40  ;;  %v726_v25 = vsel %vm723_vm9, %v725_v44, %v721_v9 }
 0x29e   :  { %v732_v19 = vsub.f32 1.0, %v726_v25  ;;  %v734_v22 = vmul.f32 %v726_v25, %v2227_v23 }
 0x29f   :  { %v730_v56 = vadd.f32 %v729_v46, %v2201_v35  ;;  %v2325_v35 = vld [vmem:[#allocation6 + $0x170] sm:$0xff] }
 0x2a1   :  { %1509 = vtanh.f32 %v730_v56 }
 0x2a7   :  { %v1510_v4 = vpop.eup %1509 }
 0x2a8   :  { %v733_v8 = vmul.f32 %v1510_v4, %v732_v19 }
 0x2aa   :  { %v735_v30 = vadd.f32 %v734_v22, %v733_v8 }
 0x2ac   :  { %v2318_v31 = vsel %vm741_vm10, %v735_v30, %v2227_v23  ;;  %v2330_v23 = vld [vmem:[#allocation6 + $0x158] sm:$0xff] }
 0x2ad   :  { %765 = vmatmul.f32.vlgmr.msrb.gmra.mxu3 %v2318_v31  ;;  %785 = vmatmul.f32.vlgmr.msrb.gmra.mxu0 %v2318_v31 }
 0x2ae   :  { %805 = vmatmul.f32.vlgmr.msrb.gmra.mxu1 %v2318_v31  ;;  %1031 = vmatpush.msrb.mxu3 %v1919_v48  ;;  %v2340_v48 = vld [vmem:[#allocation6 + $0x128] sm:$0xff] }
 0x2af   :  { %1112 = vmatpush.msrb.mxu0 %v2233_v27  ;;  %1132 = vmatpush.msrb.mxu1 %v2325_v35 }
 0x2b0   :  { %1032 = vmatpush.msrb.mxu3 %v1921_v49  ;;  %v2345_v49 = vld [vmem:[#allocation6 + $0x110] sm:$0xff] }
 0x2b1   :  { %1113 = vmatpush.msrb.mxu0 %v2238_v59  ;;  %1133 = vmatpush.msrb.mxu1 %v2330_v23 }
 0x2b2   :  { %1033 = vmatpush.msrb.mxu3 %v1935_v50  ;;  %v2350_v50 = vld [vmem:[#allocation6 + $0xf8] sm:$0xff] }
 0x2b3   :  { %1114 = vmatpush.msrb.mxu0 %v2243_v28  ;;  %1134 = vmatpush.msrb.mxu1 %v2335_v12 }
 0x2b4   :  { %1034 = vmatpush.msrb.mxu3 %v1937_v52  ;;  %v2355_v52 = vld [vmem:[#allocation6 + $0xe0] sm:$0xff] }
 0x2b5   :  { %1115 = vmatpush.msrb.mxu0 %v2248_v41  ;;  %1135 = vmatpush.msrb.mxu1 %v2340_v48 }
 0x2b6   :  { %1035 = vmatpush.msrb.mxu3 %v1951_v53  ;;  %v2360_v53 = vld [vmem:[#allocation6 + $0xc8] sm:$0xff] }
 0x2b7   :  { %1116 = vmatpush.msrb.mxu0 %v2253_v62  ;;  %1136 = vmatpush.msrb.mxu1 %v2345_v49 }
 0x2b8   :  { %1036 = vmatpush.msrb.mxu3 %v1953_v54  ;;  %v2365_v54 = vld [vmem:[#allocation6 + $0xb0] sm:$0xff] }
 0x2b9   :  { %1117 = vmatpush.msrb.mxu0 %v2258_v1  ;;  %1137 = vmatpush.msrb.mxu1 %v2350_v50 }
 0x2ba   :  { %1037 = vmatpush.msrb.mxu3 %v1967_v57  ;;  %v2370_v57 = vld [vmem:[#allocation6 + $0x98] sm:$0xff] }
 0x2bb   :  { %1118 = vmatpush.msrb.mxu0 %v2263_v0  ;;  %1138 = vmatpush.msrb.mxu1 %v2355_v52 }
 0x2bc   :  { %1038 = vmatpush.msrb.mxu3 %v1969_v58  ;;  %v2375_v58 = vld [vmem:[#allocation6 + $0x80] sm:$0xff] }
 0x2bd   :  { %1119 = vmatpush.msrb.mxu0 %v2268_v13  ;;  %1139 = vmatpush.msrb.mxu1 %v2360_v53 }
 0x2be   :  { %1039 = vmatpush.msrb.mxu3 %v1988_v2  ;;  %v2380_v2 = vld [vmem:[#allocation6 + $0x68] sm:$0xff] }
 0x2bf   :  { %1120 = vmatpush.msrb.mxu0 %v2273_v18  ;;  %1140 = vmatpush.msrb.mxu1 %v2365_v54 }
 0x2c0   :  { %1040 = vmatpush.msrb.mxu3 %v1990_v3  ;;  %v2385_v3 = vld [vmem:[#allocation6 + $0x50] sm:$0xff] }
 0x2c1   :  { %1121 = vmatpush.msrb.mxu0 %v2278_v24  ;;  %1141 = vmatpush.msrb.mxu1 %v2370_v57 }
 0x2c2   :  { %1041 = vmatpush.msrb.mxu3 %v2007_v6  ;;  %v2390_v6 = vld [vmem:[#allocation6 + $0x38] sm:$0xff] }
 0x2c3   :  { %1122 = vmatpush.msrb.mxu0 %v2283_v29  ;;  %1142 = vmatpush.msrb.mxu1 %v2375_v58 }
 0x2c4   :  { %1042 = vmatpush.msrb.mxu3 %v2009_v10  ;;  %v2395_v10 = vld [vmem:[#allocation6 + $0x20] sm:$0xff] }
 0x2c5   :  { %1123 = vmatpush.msrb.mxu0 %v2288_v32  ;;  %1143 = vmatpush.msrb.mxu1 %v2380_v2 }
 0x2c6   :  { %1043 = vmatpush.msrb.mxu3 %v2026_v15  ;;  %v2400_v15 = vld [vmem:[#allocation6 + $0x8] sm:$0xff] }
 0x2c7   :  { %1124 = vmatpush.msrb.mxu0 %v2293_v33  ;;  %1144 = vmatpush.msrb.mxu1 %v2385_v3 }
 0x2c8   :  { %1044 = vmatpush.msrb.mxu3 %v2028_v16 }
 0x2c9   :  { %1125 = vmatpush.msrb.mxu0 %v2298_v34  ;;  %1145 = vmatpush.msrb.mxu1 %v2390_v6 }
 0x2ca   :  { %1045 = vmatpush.msrb.mxu3 %v2584_v7 }
 0x2cb   :  { %1126 = vmatpush.msrb.mxu0 %v2303_v36  ;;  %1146 = vmatpush.msrb.mxu1 %v2395_v10 }
 0x2cc   :  { %1046 = vmatpush.msrb.mxu3 %v2587_v11 }
 0x2cd   :  { %1127 = vmatpush.msrb.mxu0 %v2308_v37  ;;  %1147 = vmatpush.msrb.mxu1 %v2400_v15 }
 0x32a   :  { %v786_v16 = vpop.f32.mrf.mxu0 }
 0x32b   :  { %v829_v42 = vadd.f32 %v786_v16, %v2203_v39  ;;  %v806_v4 = vpop.f32.mrf.mxu1 }
 0x32c   :  { %v849_v22 = vadd.f32 %v2146_v26, %v806_v4 }
 0x32d   :  { %v1456_v14 = vmul.f32 -1.442695, %v829_v42 }
 0x32f   :  { %1511 = vpow2.f32 %v1456_v14 }
 0x330   :  { %v766_v7 = vpop.f32.mrf.mxu3 }
 0x331   :  { %v809_v5 = vadd.f32 %v766_v7, %v2597_v63 }
 0x333   :  { %v1455_v60 = vmul.f32 -1.442695, %v809_v5 }
 0x335   :  { %v1512_v38 = vpop.eup %1511  ;;  %1513 = vpow2.f32 %v1455_v60 }
 0x336   :  { %v833_v20 = vadd.f32 1.0, %v1512_v38 }
 0x338   :  { %1515 = vrcp.f32 %v833_v20  ;;  %v845_v14 = vand.u32 2147483648, %v833_v20  ;;  %vm839_vm0 = vweird.f32 %v833_v20  ;;  %v843_v63 = vand.u32 2147483647, %v833_v20 }
 0x33a   :  { %v846_v38 = vor.u32 1.1754944e-38, %v845_v14  ;;  %vm844_vm2 = vcmp.eq.f32.partialorder %v843_v63, 8.507059e+37 }
 0x33b   :  { %v1514_v11 = vpop.eup %1513 }
 0x33c   :  { %v813_v21 = vadd.f32 1.0, %v1514_v11 }
 0x33e   :  { %1517 = vrcp.f32 %v813_v21  ;;  %v1516_v40 = vpop.eup %1515  ;;  %v825_v39 = vand.u32 2147483648, %v813_v21  ;;  %v823_v25 = vand.u32 2147483647, %v813_v21  ;;  %vm819_vm12 = vweird.f32 %v813_v21 }
 0x33f   :  { %v835_v17 = vmul.f32 %v1516_v40, %v833_v20  ;;  %vm840_vm15 = vweird.f32 %v1516_v40  ;;  %v2419_v20 = vld [vmem:[#allocation6 + $0x160] sm:$0xff] }
 0x340   :  { %v826_v8 = vor.u32 1.1754944e-38, %v825_v39  ;;  %vm824_vm14 = vcmp.eq.f32.partialorder %v823_v25, 8.507059e+37  ;;  %vm841_vm1 = vmor %vm839_vm0, %vm840_vm15 }
 0x341   :  { %v836_v56 = vsub.f32 1.0, %v835_v17 }
 0x343   :  { %v837_v19 = vmul.f32 %v1516_v40, %v836_v56  ;;  %v861_v56 = vpop.permute.xlu2 %860 }
 0x344   :  { %v1518_v46 = vpop.eup %1517  ;;  %vm862_vm3 = vcmp.eq.s32.totalorder %v861_v56, 1 }
 0x345   :  { %v815_v61 = vmul.f32 %v1518_v46, %v813_v21  ;;  %vm820_vm11 = vweird.f32 %v1518_v46  ;;  %v838_v42 = vadd.f32 %v1516_v40, %v837_v19 }
 0x346   :  { %vm821_vm13 = vmor %vm819_vm12, %vm820_vm11 }
 0x347   :  { %v816_v9 = vsub.f32 1.0, %v815_v61  ;;  %v842_v60 = vsel %vm841_vm1, %v1516_v40, %v838_v42  ;;  %v2429_v40 = vld [vmem:[#allocation6 + $0x130] sm:$0xff] }
 0x348   :  { %v847_v11 = vsel %vm844_vm2, %v846_v38, %v842_v60 }
 0x349   :  { %v817_v44 = vmul.f32 %v1518_v46, %v816_v9  ;;  %v853_v21 = vsub.f32 1.0, %v847_v11 }
 0x34b   :  { %v818_v45 = vadd.f32 %v1518_v46, %v817_v44 }
 0x34d   :  { %v822_v30 = vsel %vm821_vm13, %v1518_v46, %v818_v45  ;;  %v855_v46 = vmul.f32 %v847_v11, %v2318_v31 }
 0x34e   :  { %v827_v16 = vsel %vm824_vm14, %v826_v8, %v822_v30 }
 0x34f   :  { %v850_v7 = vmul.f32 %v849_v22, %v827_v16 }
 0x351   :  { %v851_v5 = vadd.f32 %v850_v7, %v2205_v43  ;;  %v2414_v43 = vld [vmem:[#allocation6 + $0x178] sm:$0xff] }
 0x353   :  { %1519 = vtanh.f32 %v851_v5 }
 0x359   :  { %v1520_v17 = vpop.eup %1519 }
 0x35a   :  { %v854_v61 = vmul.f32 %v1520_v17, %v853_v21 }
 0x35c   :  { %v856_v9 = vadd.f32 %v855_v46, %v854_v61  ;;  %v2599_v46 = vld [vmem:[#allocation23_spill] sm:$0xff] }
 0x35e   :  { %v2409_v39 = vsel %vm862_vm3, %v856_v9, %v2318_v31  ;;  %v2424_v31 = vld [vmem:[#allocation6 + $0x148] sm:$0xff] }
 0x35f   :  { %886 = vmatmul.f32.vlgmr.msrb.gmra.mxu2 %v2409_v39  ;;  %906 = vmatmul.f32.vlgmr.msra.gmra.mxu3 %v2409_v39 }
 0x360   :  { %926 = vmatmul.f32.vlgmr.msra.gmra.mxu0 %v2409_v39  ;;  %1152 = vmatpush.msrb.mxu2 %v2414_v43 }
 0x361   :  { %1233 = vmatpush.msra.mxu3 %v2233_v27  ;;  %1253 = vmatpush.msra.mxu0 %v2325_v35  ;;  %v2434_v27 = vld [vmem:[#allocation6 + $0x118] sm:$0xff]  ;;  %v2598_v35 = vld [vmem:[#allocation22_spill] sm:$0xff] }
 0x362   :  { %1153 = vmatpush.msrb.mxu2 %v2419_v20 }
 0x363   :  { %1234 = vmatpush.msra.mxu3 %v2238_v59  ;;  %1254 = vmatpush.msra.mxu0 %v2330_v23  ;;  %v2439_v59 = vld [vmem:[#allocation6 + $0x100] sm:$0xff] }
 0x364   :  { %1154 = vmatpush.msrb.mxu2 %v2424_v31 }
 0x365   :  { %1235 = vmatpush.msra.mxu3 %v2243_v28  ;;  %1255 = vmatpush.msra.mxu0 %v2335_v12  ;;  %v2444_v28 = vld [vmem:[#allocation6 + $0xe8] sm:$0xff] }
 0x366   :  { %1155 = vmatpush.msrb.mxu2 %v2429_v40 }
 0x367   :  { %1236 = vmatpush.msra.mxu3 %v2248_v41  ;;  %1256 = vmatpush.msra.mxu0 %v2340_v48  ;;  %v2449_v41 = vld [vmem:[#allocation6 + $0xd0] sm:$0xff] }
 0x368   :  { %1156 = vmatpush.msrb.mxu2 %v2434_v27 }
 0x369   :  { %1237 = vmatpush.msra.mxu3 %v2253_v62  ;;  %1257 = vmatpush.msra.mxu0 %v2345_v49  ;;  %v2454_v62 = vld [vmem:[#allocation6 + $0xb8] sm:$0xff] }
 0x36a   :  { %1157 = vmatpush.msrb.mxu2 %v2439_v59 }
 0x36b   :  { %1238 = vmatpush.msra.mxu3 %v2258_v1  ;;  %1258 = vmatpush.msra.mxu0 %v2350_v50  ;;  %v2459_v1 = vld [vmem:[#allocation6 + $0xa0] sm:$0xff] }
 0x36c   :  { %1158 = vmatpush.msrb.mxu2 %v2444_v28 }
 0x36d   :  { %1239 = vmatpush.msra.mxu3 %v2263_v0  ;;  %1259 = vmatpush.msra.mxu0 %v2355_v52  ;;  %v2464_v0 = vld [vmem:[#allocation6 + $0x88] sm:$0xff] }
 0x36e   :  { %1159 = vmatpush.msrb.mxu2 %v2449_v41 }
 0x36f   :  { %1240 = vmatpush.msra.mxu3 %v2268_v13  ;;  %1260 = vmatpush.msra.mxu0 %v2360_v53  ;;  %v2469_v13 = vld [vmem:[#allocation6 + $0x70] sm:$0xff] }
 0x370   :  { %1160 = vmatpush.msrb.mxu2 %v2454_v62 }
 0x371   :  { %1241 = vmatpush.msra.mxu3 %v2273_v18  ;;  %1261 = vmatpush.msra.mxu0 %v2365_v54  ;;  %v2474_v18 = vld [vmem:[#allocation6 + $0x58] sm:$0xff] }
 0x372   :  { %1161 = vmatpush.msrb.mxu2 %v2459_v1 }
 0x373   :  { %1242 = vmatpush.msra.mxu3 %v2278_v24  ;;  %1262 = vmatpush.msra.mxu0 %v2370_v57  ;;  %v2479_v24 = vld [vmem:[#allocation6 + $0x40] sm:$0xff] }
 0x374   :  { %1162 = vmatpush.msrb.mxu2 %v2464_v0 }
 0x375   :  { %1243 = vmatpush.msra.mxu3 %v2283_v29  ;;  %1263 = vmatpush.msra.mxu0 %v2375_v58  ;;  %v2484_v29 = vld [vmem:[#allocation6 + $0x28] sm:$0xff] }
 0x376   :  { %1163 = vmatpush.msrb.mxu2 %v2469_v13 }
 0x377   :  { %1244 = vmatpush.msra.mxu3 %v2288_v32  ;;  %1264 = vmatpush.msra.mxu0 %v2380_v2  ;;  %v2489_v32 = vld [vmem:[#allocation6 + $0x10] sm:$0xff] }
 0x378   :  { %1164 = vmatpush.msrb.mxu2 %v2474_v18 }
 0x379   :  { %1245 = vmatpush.msra.mxu3 %v2293_v33  ;;  %1265 = vmatpush.msra.mxu0 %v2385_v3 }
 0x37a   :  { %1165 = vmatpush.msrb.mxu2 %v2479_v24 }
 0x37b   :  { %1246 = vmatpush.msra.mxu3 %v2298_v34  ;;  %1266 = vmatpush.msra.mxu0 %v2390_v6 }
 0x37c   :  { %1166 = vmatpush.msrb.mxu2 %v2484_v29 }
 0x37d   :  { %1247 = vmatpush.msra.mxu3 %v2303_v36  ;;  %1267 = vmatpush.msra.mxu0 %v2395_v10 }
 0x37e   :  { %1167 = vmatpush.msrb.mxu2 %v2489_v32 }
 0x37f   :  { %1248 = vmatpush.msra.mxu3 %v2308_v37  ;;  %1268 = vmatpush.msra.mxu0 %v2400_v15 }
 0x3dd   :  { %v927_v15 = vpop.f32.mrf.mxu0 }
 0x3de   :  { %v970_v4 = vadd.f32 %v2146_v26, %v927_v15  ;;  %v982_v26 = vpop.permute.xlu0 %981 }
 0x3df   :  { %vm983_vm12 = vcmp.eq.s32.totalorder %v982_v26, 1 }
 0x3e2   :  { %v887_v33 = vpop.f32.mrf.mxu2  ;;  %v907_v34 = vpop.f32.mrf.mxu3 }
 0x3e3   :  { %v930_v23 = vadd.f32 %v887_v33, %v2598_v35  ;;  %v950_v12 = vadd.f32 %v907_v34, %v2207_v47  ;;  %v2526_v35 = vld [vmem:[%s2557_s4] ss:$0 sm:$0xff] }
 0x3e5   :  { %v1457_v48 = vmul.f32 -1.442695, %v930_v23  ;;  %v1458_v49 = vmul.f32 -1.442695, %v950_v12 }
 0x3e7   :  { %1521 = vpow2.f32 %v1457_v48 }
 0x3e8   :  { %1523 = vpow2.f32 %v1458_v49 }
 0x3ed   :  { %v1522_v36 = vpop.eup %1521 }
 0x3ee   :  { %v1524_v50 = vpop.eup %1523  ;;  %v934_v52 = vadd.f32 1.0, %v1522_v36 }
 0x3ef   :  { %v954_v53 = vadd.f32 1.0, %v1524_v50 }
 0x3f0   :  { %1525 = vrcp.f32 %v934_v52  ;;  %v946_v3 = vand.u32 2147483648, %v934_v52  ;;  %v944_v47 = vand.u32 2147483647, %v934_v52  ;;  %vm940_vm5 = vweird.f32 %v934_v52 }
 0x3f1   :  { %1527 = vrcp.f32 %v954_v53  ;;  %v966_v16 = vand.u32 2147483648, %v954_v53  ;;  %vm960_vm9 = vweird.f32 %v954_v53  ;;  %v964_v42 = vand.u32 2147483647, %v954_v53 }
 0x3f2   :  { %v947_v19 = vor.u32 1.1754944e-38, %v946_v3  ;;  %vm945_vm7 = vcmp.eq.f32.partialorder %v944_v47, 8.507059e+37 }
 0x3f3   :  { %v967_v63 = vor.u32 1.1754944e-38, %v966_v16  ;;  %vm965_vm11 = vcmp.eq.f32.partialorder %v964_v42, 8.507059e+37 }
 0x3f6   :  { %v1526_v54 = vpop.eup %1525 }
 0x3f7   :  { %v1528_v37 = vpop.eup %1527  ;;  %v936_v57 = vmul.f32 %v1526_v54, %v934_v52  ;;  %vm941_vm4 = vweird.f32 %v1526_v54 }
 0x3f8   :  { %v956_v58 = vmul.f32 %v1528_v37, %v954_v53  ;;  %vm942_vm6 = vmor %vm940_vm5, %vm941_vm4  ;;  %vm961_vm8 = vweird.f32 %v1528_v37  ;;  %v2600_v53 = vld [vmem:[#allocation17_spill] sm:$0xff] }
 0x3f9   :  { %v937_v2 = vsub.f32 1.0, %v936_v57  ;;  %vm962_vm10 = vmor %vm960_vm9, %vm961_vm8 }
 0x3fa   :  { %v957_v6 = vsub.f32 1.0, %v956_v58 }
 0x3fb   :  { %v938_v10 = vmul.f32 %v1526_v54, %v937_v2 }
 0x3fc   :  { %v958_v44 = vmul.f32 %v1528_v37, %v957_v6  ;;  %v1103_v6 = vpop.permute.xlu1 %1102 }
 0x3fd   :  { %v939_v25 = vadd.f32 %v1526_v54, %v938_v10  ;;  %vm1104_vm5 = vcmp.eq.s32.totalorder %v1103_v6, 1  ;;  %v1354_v6 = vld [vmem:[#allocation8 + $0x30] sm:$0xff] }
 0x3fe   :  { %v959_v22 = vadd.f32 %v1528_v37, %v958_v44 }
 0x3ff   :  { %v943_v45 = vsel %vm942_vm6, %v1526_v54, %v939_v25 }
 0x400   :  { %v948_v8 = vsel %vm945_vm7, %v947_v19, %v943_v45  ;;  %v963_v7 = vsel %vm962_vm10, %v1528_v37, %v959_v22 }
 0x401   :  { %v971_v30 = vmul.f32 %v970_v4, %v948_v8  ;;  %v968_v5 = vsel %vm965_vm11, %v967_v63, %v963_v7  ;;  %v2601_v4 = vld [vmem:[#allocation24_spill] sm:$0xff]  ;;  %v2602_v8 = vld [vmem:[#allocation13_spill] sm:$0xff] }
 0x402   :  { %v974_v60 = vsub.f32 1.0, %v968_v5  ;;  %v976_v21 = vmul.f32 %v968_v5, %v2409_v39 }
 0x403   :  { %v972_v14 = vadd.f32 %v971_v30, %v2209_v51 }
 0x405   :  { %1529 = vtanh.f32 %v972_v14 }
 0x40b   :  { %v1530_v38 = vpop.eup %1529 }
 0x40c   :  { %v975_v11 = vmul.f32 %v1530_v38, %v974_v60 }
 0x40e   :  { %v977_v17 = vadd.f32 %v976_v21, %v975_v11 }
 0x410   :  { %v2500_v61 = vsel %vm983_vm12, %v977_v17, %v2409_v39 }
 0x411   :  { %1007 = vmatmul.f32.vlgmr.msra.gmra.mxu1 %v2500_v61  ;;  %1027 = vmatmul.f32.vlgmr.msra.gmra.mxu2 %v2500_v61 }
 0x412   :  { %1047 = vmatmul.f32.vlgmr.msrb.gmra.mxu3 %v2500_v61  ;;  %1273 = vmatpush.msra.mxu1 %v2414_v43 }
 0x414   :  { %1274 = vmatpush.msra.mxu1 %v2419_v20 }
 0x416   :  { %1275 = vmatpush.msra.mxu1 %v2424_v31 }
 0x418   :  { %1276 = vmatpush.msra.mxu1 %v2429_v40 }
 0x41a   :  { %1277 = vmatpush.msra.mxu1 %v2434_v27 }
 0x41c   :  { %1278 = vmatpush.msra.mxu1 %v2439_v59 }
 0x41e   :  { %1279 = vmatpush.msra.mxu1 %v2444_v28 }
 0x420   :  { %1280 = vmatpush.msra.mxu1 %v2449_v41 }
 0x422   :  { %1281 = vmatpush.msra.mxu1 %v2454_v62 }
 0x424   :  { %1282 = vmatpush.msra.mxu1 %v2459_v1 }
 0x426   :  { %1283 = vmatpush.msra.mxu1 %v2464_v0 }
 0x428   :  { %1284 = vmatpush.msra.mxu1 %v2469_v13 }
 0x42a   :  { %1285 = vmatpush.msra.mxu1 %v2474_v18 }
 0x42c   :  { %1286 = vmatpush.msra.mxu1 %v2479_v24 }
 0x42e   :  { %1287 = vmatpush.msra.mxu1 %v2484_v29 }
 0x430   :  { %1288 = vmatpush.msra.mxu1 %v2489_v32 }
 0x48e   :  { %v1008_v51 = vpop.f32.mrf.mxu1 }
 0x48f   :  { %v1051_v56 = vadd.f32 %v1008_v51, %v2599_v46 }
 0x491   :  { %v1459_v9 = vmul.f32 -1.442695, %v1051_v56 }
 0x493   :  { %1531 = vpow2.f32 %v1459_v9 }
 0x494   :  { %v1028_v39 = vpop.f32.mrf.mxu2 }
 0x495   :  { %v1071_v43 = vadd.f32 %v1028_v39, %v2211_v55  ;;  %v1048_v24 = vpop.f32.mrf.mxu3 }
 0x496   :  { %v1091_v23 = vadd.f32 %v2526_v35, %v1048_v24 }
 0x497   :  { %v1460_v20 = vmul.f32 -1.442695, %v1071_v43 }
 0x499   :  { %v1532_v31 = vpop.eup %1531  ;;  %1533 = vpow2.f32 %v1460_v20 }
 0x49a   :  { %v1055_v40 = vadd.f32 1.0, %v1532_v31 }
 0x49c   :  { %1535 = vrcp.f32 %v1055_v40  ;;  %v1067_v1 = vand.u32 2147483648, %v1055_v40  ;;  %v1065_v13 = vand.u32 2147483647, %v1055_v40  ;;  %vm1061_vm14 = vweird.f32 %v1055_v40 }
 0x49e   :  { %v1068_v55 = vor.u32 1.1754944e-38, %v1067_v1  ;;  %vm1066_vm0 = vcmp.eq.f32.partialorder %v1065_v13, 8.507059e+37 }
 0x49f   :  { %v1534_v27 = vpop.eup %1533 }
 0x4a0   :  { %v1075_v59 = vadd.f32 1.0, %v1534_v27 }
 0x4a2   :  { %v1536_v28 = vpop.eup %1535  ;;  %1537 = vrcp.f32 %v1075_v59  ;;  %v1087_v49 = vand.u32 2147483648, %v1075_v59  ;;  %v1085_v50 = vand.u32 2147483647, %v1075_v59  ;;  %vm1081_vm2 = vweird.f32 %v1075_v59 }
 0x4a3   :  { %v1057_v41 = vmul.f32 %v1536_v28, %v1055_v40  ;;  %vm1062_vm13 = vweird.f32 %v1536_v28 }
 0x4a4   :  { %vm1063_vm15 = vmor %vm1061_vm14, %vm1062_vm13  ;;  %v1088_v37 = vor.u32 1.1754944e-38, %v1087_v49  ;;  %vm1086_vm4 = vcmp.eq.f32.partialorder %v1085_v50, 8.507059e+37  ;;  %v1360_v49 = vld [vmem:[#allocation8 + $0x60] sm:$0xff] }
 0x4a5   :  { %v1058_v62 = vsub.f32 1.0, %v1057_v41  ;;  %v2603_v41 = vld [vmem:[#allocation15_spill] sm:$0xff] }
 0x4a7   :  { %v1059_v0 = vmul.f32 %v1536_v28, %v1058_v62 }
 0x4a8   :  { %v1538_v18 = vpop.eup %1537 }
 0x4a9   :  { %v1077_v29 = vmul.f32 %v1538_v18, %v1075_v59  ;;  %v1060_v32 = vadd.f32 %v1536_v28, %v1059_v0  ;;  %vm1082_vm1 = vweird.f32 %v1538_v18 }
 0x4aa   :  { %vm1083_vm3 = vmor %vm1081_vm2, %vm1082_vm1 }
 0x4ab   :  { %v1078_v33 = vsub.f32 1.0, %v1077_v29  ;;  %v1064_v34 = vsel %vm1063_vm15, %v1536_v28, %v1060_v32  ;;  %v1224_v29 = vpop.permute.xlu2 %1223 }
 0x4ac   :  { %v1069_v12 = vsel %vm1066_vm0, %v1068_v55, %v1064_v34  ;;  %vm1225_vm14 = vcmp.eq.s32.totalorder %v1224_v29, 1 }
 0x4ad   :  { %v1079_v48 = vmul.f32 %v1538_v18, %v1078_v33  ;;  %v1092_v36 = vmul.f32 %v1091_v23, %v1069_v12  ;;  %v1363_v23 = vld [vmem:[#allocation8 + $0x78] sm:$0xff]  ;;  %v1362_v12 = vld [vmem:[#allocation8 + $0x70] sm:$0xff] }
 0x4ae   :  { %1368 = vmatpush.msra.mxu2 %v1363_v23 }
 0x4af   :  { %v1080_v52 = vadd.f32 %v1538_v18, %v1079_v48  ;;  %v1093_v54 = vadd.f32 %v1092_v36, %v2600_v53  ;;  %v1361_v48 = vld [vmem:[#allocation8 + $0x68] sm:$0xff]  ;;  %v1359_v36 = vld [vmem:[#allocation8 + $0x58] sm:$0xff]  ;;  %v2604_v53 = vld [vmem:[#allocation18_spill] sm:$0xff] }
 0x4b0   :  { %1369 = vmatpush.msra.mxu2 %v1362_v12 }
 0x4b1   :  { %v1084_v57 = vsel %vm1083_vm3, %v1538_v18, %v1080_v52  ;;  %1539 = vtanh.f32 %v1093_v54  ;;  %v1358_v52 = vld [vmem:[#allocation8 + $0x50] sm:$0xff] }
 0x4b2   :  { %v1089_v58 = vsel %vm1086_vm4, %v1088_v37, %v1084_v57  ;;  %1370 = vmatpush.msra.mxu2 %v1361_v48  ;;  %v1357_v37 = vld [vmem:[#allocation8 + $0x48] sm:$0xff] }
 0x4b3   :  { %v1095_v2 = vsub.f32 1.0, %v1089_v58  ;;  %v1097_v47 = vmul.f32 %v1089_v58, %v2500_v61  ;;  %v1356_v58 = vld [vmem:[#allocation8 + $0x40] sm:$0xff] }
 0x4b4   :  { %1371 = vmatpush.msra.mxu2 %v1360_v49 }
 0x4b6   :  { %1372 = vmatpush.msra.mxu2 %v1359_v36 }
 0x4b7   :  { %v1540_v3 = vpop.eup %1539 }
 0x4b8   :  { %v1096_v10 = vmul.f32 %v1540_v3, %v1095_v2  ;;  %1373 = vmatpush.msra.mxu2 %v1358_v52  ;;  %v1355_v2 = vld [vmem:[#allocation8 + $0x38] sm:$0xff] }
 0x4ba   :  { %v1098_v15 = vadd.f32 %v1097_v47, %v1096_v10  ;;  %1374 = vmatpush.msra.mxu2 %v1357_v37  ;;  %v2605_v10 = vld [vmem:[#allocation25_spill] sm:$0xff] }
 0x4bc   :  { %v1105_v44 = vsel %vm1104_vm5, %v1098_v15, %v2500_v61  ;;  %1375 = vmatpush.msra.mxu2 %v1356_v58  ;;  %v1353_v15 = vld [vmem:[#allocation8 + $0x28] sm:$0xff] }
 0x4bd   :  { %1128 = vmatmul.f32.vlgmr.msrb.gmra.mxu0 %v1105_v44  ;;  %1148 = vmatmul.f32.vlgmr.msrb.gmra.mxu1 %v1105_v44 }
 0x4be   :  { %1168 = vmatmul.f32.vlgmr.msrb.gmra.mxu2 %v1105_v44 }
 0x4bf   :  { %1376 = vmatpush.msra.mxu2 %v1355_v2 }
 0x4c1   :  { %1377 = vmatpush.msra.mxu2 %v1354_v6 }
 0x4c3   :  { %1378 = vmatpush.msra.mxu2 %v1353_v15 }
 0x53a   :  { %v1129_v25 = vpop.f32.mrf.mxu0  ;;  %v1149_v19 = vpop.f32.mrf.mxu1 }
 0x53b   :  { %v1172_v45 = vadd.f32 %v1129_v25, %v2601_v4  ;;  %v1192_v22 = vadd.f32 %v1149_v19, %v2602_v8  ;;  %v1352_v25 = vld [vmem:[#allocation8 + $0x20] sm:$0xff]  ;;  %v1350_v8 = vld [vmem:[#allocation8 + $0x10] sm:$0xff] }
 0x53c   :  { %1379 = vmatpush.msra.mxu2 %v1352_v25 }
 0x53d   :  { %v1461_v30 = vmul.f32 -1.442695, %v1172_v45  ;;  %v1462_v16 = vmul.f32 -1.442695, %v1192_v22  ;;  %v1351_v45 = vld [vmem:[#allocation8 + $0x18] sm:$0xff]  ;;  %v1349_v22 = vld [vmem:[#allocation8 + $0x8] sm:$0xff] }
 0x53e   :  { %1380 = vmatpush.msra.mxu2 %v1351_v45 }
 0x53f   :  { %1541 = vpow2.f32 %v1461_v30 }
 0x540   :  { %1543 = vpow2.f32 %v1462_v16  ;;  %1381 = vmatpush.msra.mxu2 %v1350_v8 }
 0x541   :  { %v1169_v56 = vpop.f32.mrf.mxu2 }
 0x542   :  { %v1212_v20 = vadd.f32 %v2526_v35, %v1169_v56  ;;  %1382 = vmatpush.msra.mxu2 %v1349_v22 }
 0x545   :  { %v1542_v42 = vpop.eup %1541 }
 0x546   :  { %v1544_v14 = vpop.eup %1543  ;;  %v1176_v7 = vadd.f32 1.0, %v1542_v42  ;;  %v1348_v42 = vld [vmem:[#allocation8] sm:$0xff] }
 0x547   :  { %v1196_v63 = vadd.f32 1.0, %v1544_v14  ;;  %1383 = vmatpush.msra.mxu2 %v1348_v42 }
 0x548   :  { %1545 = vrcp.f32 %v1176_v7  ;;  %v1188_v17 = vand.u32 2147483648, %v1176_v7  ;;  %v1186_v51 = vand.u32 2147483647, %v1176_v7  ;;  %vm1182_vm7 = vweird.f32 %v1176_v7 }
 0x549   :  { %1547 = vrcp.f32 %v1196_v63  ;;  %v1208_v27 = vand.u32 2147483648, %v1196_v63  ;;  %vm1202_vm11 = vweird.f32 %v1196_v63  ;;  %v1206_v28 = vand.u32 2147483647, %v1196_v63 }
 0x54a   :  { %v1189_v39 = vor.u32 1.1754944e-38, %v1188_v17  ;;  %vm1187_vm9 = vcmp.eq.f32.partialorder %v1186_v51, 8.507059e+37 }
 0x54b   :  { %v1209_v0 = vor.u32 1.1754944e-38, %v1208_v27  ;;  %vm1207_vm13 = vcmp.eq.f32.partialorder %v1206_v28, 8.507059e+37  ;;  %v2606_v27 = vld [vmem:[#allocation14_spill] sm:$0xff] }
 0x54e   :  { %v1546_v5 = vpop.eup %1545 }
 0x54f   :  { %v1548_v60 = vpop.eup %1547  ;;  %v1178_v38 = vmul.f32 %v1546_v5, %v1176_v7  ;;  %vm1183_vm6 = vweird.f32 %v1546_v5 }
 0x550   :  { %v1198_v26 = vmul.f32 %v1548_v60, %v1196_v63  ;;  %vm1184_vm8 = vmor %vm1182_vm7, %vm1183_vm6  ;;  %vm1203_vm10 = vweird.f32 %v1548_v60 }
 0x551   :  { %v1179_v11 = vsub.f32 1.0, %v1178_v38  ;;  %vm1204_vm12 = vmor %vm1202_vm11, %vm1203_vm10 }
 0x552   :  { %v1199_v21 = vsub.f32 1.0, %v1198_v26 }
 0x553   :  { %v1180_v61 = vmul.f32 %v1546_v5, %v1179_v11 }
 0x554   :  { %v1200_v46 = vmul.f32 %v1548_v60, %v1199_v21 }
 0x555   :  { %v1181_v9 = vadd.f32 %v1546_v5, %v1180_v61 }
 0x556   :  { %v1201_v31 = vadd.f32 %v1548_v60, %v1200_v46 }
 0x557   :  { %v1185_v43 = vsel %vm1184_vm8, %v1546_v5, %v1181_v9 }
 0x558   :  { %v1190_v40 = vsel %vm1187_vm9, %v1189_v39, %v1185_v43  ;;  %v1205_v1 = vsel %vm1204_vm12, %v1548_v60, %v1201_v31 }
 0x559   :  { %v1213_v59 = vmul.f32 %v1212_v20, %v1190_v40  ;;  %v1210_v13 = vsel %vm1207_vm13, %v1209_v0, %v1205_v1 }
 0x55a   :  { %v1216_v18 = vsub.f32 1.0, %v1210_v13  ;;  %v1218_v55 = vmul.f32 %v1210_v13, %v1105_v44 }
 0x55b   :  { %v1214_v62 = vadd.f32 %v1213_v59, %v2603_v41 }
 0x55d   :  { %1549 = vtanh.f32 %v1214_v62 }
 0x563   :  { %v1550_v24 = vpop.eup %1549 }
 0x564   :  { %v1217_v32 = vmul.f32 %v1550_v24, %v1216_v18 }
 0x566   :  { %v1219_v33 = vadd.f32 %v1218_v55, %v1217_v32  ;;  %v1480_v32 = vld [vmem:[%s2559_s6] ss:$0 sm:$0xff] }
 0x568   :  { %v2536_v34 = vsel %vm1225_vm14, %v1219_v33, %v1105_v44 }
 0x569   :  { %1249 = vmatmul.f32.vlgmr.msra.gmra.mxu3 %v2536_v34  ;;  %1269 = vmatmul.f32.vlgmr.msra.gmra.mxu0 %v2536_v34 }
 0x56a   :  { %1289 = vmatmul.f32.vlgmr.msra.gmra.mxu1 %v2536_v34 }
 0x5e6   :  { %v1270_v50 = vpop.f32.mrf.mxu0 }
 0x5e7   :  { %v1313_v54 = vadd.f32 %v1270_v50, %v2604_v53  ;;  %v1290_v61 = vpop.f32.mrf.mxu1 }
 0x5e8   :  { %v1333_v56 = vadd.f32 %v2526_v35, %v1290_v61  ;;  %v1345_v35 = vpop.permute.xlu0 %1344 }
 0x5e9   :  { %v1464_v57 = vmul.f32 -1.442695, %v1313_v54  ;;  %vm1346_vm7 = vcmp.eq.s32.totalorder %v1345_v35, 1 }
 0x5eb   :  { %1551 = vpow2.f32 %v1464_v57 }
 0x5ec   :  { %v1250_v3 = vpop.f32.mrf.mxu3 }
 0x5ed   :  { %v1293_v47 = vadd.f32 %v1250_v3, %v2605_v10 }
 0x5ef   :  { %v1463_v44 = vmul.f32 -1.442695, %v1293_v47 }
 0x5f1   :  { %v1552_v19 = vpop.eup %1551  ;;  %1553 = vpow2.f32 %v1463_v44 }
 0x5f2   :  { %v1317_v4 = vadd.f32 1.0, %v1552_v19 }
 0x5f4   :  { %1555 = vrcp.f32 %v1317_v4  ;;  %v1329_v20 = vand.u32 2147483648, %v1317_v4  ;;  %vm1323_vm4 = vweird.f32 %v1317_v4  ;;  %v1327_v40 = vand.u32 2147483647, %v1317_v4 }
 0x5f6   :  { %v1330_v41 = vor.u32 1.1754944e-38, %v1329_v20  ;;  %vm1328_vm6 = vcmp.eq.f32.partialorder %v1327_v40, 8.507059e+37 }
 0x5f7   :  { %v1554_v30 = vpop.eup %1553 }
 0x5f8   :  { %v1297_v16 = vadd.f32 1.0, %v1554_v30 }
 0x5fa   :  { %1557 = vrcp.f32 %v1297_v16  ;;  %v1556_v14 = vpop.eup %1555  ;;  %v1309_v26 = vand.u32 2147483648, %v1297_v16  ;;  %v1307_v21 = vand.u32 2147483647, %v1297_v16  ;;  %vm1303_vm0 = vweird.f32 %v1297_v16 }
 0x5fb   :  { %v1319_v7 = vmul.f32 %v1556_v14, %v1317_v4  ;;  %vm1324_vm3 = vweird.f32 %v1556_v14 }
 0x5fc   :  { %v1310_v46 = vor.u32 1.1754944e-38, %v1309_v26  ;;  %vm1308_vm2 = vcmp.eq.f32.partialorder %v1307_v21, 8.507059e+37  ;;  %vm1325_vm5 = vmor %vm1323_vm4, %vm1324_vm3 }
 0x5fd   :  { %v1320_v60 = vsub.f32 1.0, %v1319_v7 }
 0x5ff   :  { %v1321_v17 = vmul.f32 %v1556_v14, %v1320_v60 }
 0x600   :  { %v1558_v63 = vpop.eup %1557 }
 0x601   :  { %v1299_v5 = vmul.f32 %v1558_v63, %v1297_v16  ;;  %vm1304_vm15 = vweird.f32 %v1558_v63  ;;  %v1322_v43 = vadd.f32 %v1556_v14, %v1321_v17 }
 0x602   :  { %vm1305_vm1 = vmor %vm1303_vm0, %vm1304_vm15 }
 0x603   :  { %v1300_v38 = vsub.f32 1.0, %v1299_v5  ;;  %v1326_v28 = vsel %vm1325_vm5, %v1556_v14, %v1322_v43 }
 0x604   :  { %v1331_v62 = vsel %vm1328_vm6, %v1330_v41, %v1326_v28 }
 0x605   :  { %v1301_v11 = vmul.f32 %v1558_v63, %v1300_v38  ;;  %v1337_v1 = vsub.f32 1.0, %v1331_v62  ;;  %v1339_v18 = vmul.f32 %v1331_v62, %v2536_v34 }
 0x607   :  { %v1302_v51 = vadd.f32 %v1558_v63, %v1301_v11 }
 0x609   :  { %v1306_v9 = vsel %vm1305_vm1, %v1558_v63, %v1302_v51 }
 0x60a   :  { %v1311_v39 = vsel %vm1308_vm2, %v1310_v46, %v1306_v9 }
 0x60b   :  { %v1334_v31 = vmul.f32 %v1333_v56, %v1311_v39 }
 0x60d   :  { %v1335_v59 = vadd.f32 %v1334_v31, %v2606_v27 }
 0x60f   :  { %1559 = vtanh.f32 %v1335_v59 }
 0x615   :  { %v1560_v0 = vpop.eup %1559 }
 0x616   :  { %v1338_v13 = vmul.f32 %v1560_v0, %v1337_v1 }
 0x618   :  { %v1340_v24 = vadd.f32 %v1339_v18, %v1338_v13 }
 0x61a   :  { %v1347_v29 = vsel %vm1346_vm7, %v1340_v24, %v2536_v34 }
 0x61b   :  { %1384 = vmatmul.f32.vlgmr.msra.gmra.mxu2 %v1347_v29 }
 0x69e   :  { %v1385_v55 = vpop.f32.mrf.mxu2 }
 0x69f   :  { %v1386_v33 = vadd.f32 %v1480_v32, %v1385_v55 }
 0x6a1   :  { %1388 = vst [vmem:[#allocation9] sm:$0xff] %v1386_v33 }
 0x6a2   :  { %1399 = dma.vmem_to_hbm [thread:$0]  %s1395_s3, 128, %s1397_s18, [#allocation5]  }
 0x6a3   :  { %1710 = dma.done.wait [#allocation5], 128  }
 0x6a4   :  { %1711 = vsyncadd [#allocation5], 4294967168 }
 0x6a5   :  { %1404 = vsyncpa [#allocation4], 1 }
 0x6a6   :  { %1405 = vsyncpa [#allocation7], 1 }
 0x6a7   :  { %1406 = vsyncpa [#allocation5], 1 }

</bundles_post_ra>
